<compile_context>
chip_gen: v7x
topology: tpu7x:2x2x1
jax: 0.10.0
libtpu: 0.0.40
codegen_flags: <defaults>
</compile_context>

<pallas_src>
import functools

import numpy as np

import jax
import jax.numpy as jnp
from jax import lax
from jax.experimental import pallas as pl
from jax.experimental.pallas import tpu as pltpu


# Conv configs for VGG19 features[0:21]: (cin, cout, pool_after, block_end).
# block_end marks relu1_1 / relu2_1 / relu3_1 / relu4_1 (the four block outputs
# of the PyTorch VGGEncoder); pool_after marks convs followed by MaxPool2d(2,2).
_CONVS = (
    (3,   64,  False, True),   # conv1_1 -> relu1_1  (block 0 output)
    (64,  64,  True,  False),  # conv1_2 (+ pool1)
    (64,  128, False, True),   # conv2_1 -> relu2_1  (block 1 output)
    (128, 128, True,  False),  # conv2_2 (+ pool2)
    (128, 256, False, True),   # conv3_1 -> relu3_1  (block 2 output)
    (256, 256, False, False),  # conv3_2
    (256, 256, False, False),  # conv3_3
    (256, 256, True,  False),  # conv3_4 (+ pool3)
    (256, 512, False, True),   # conv4_1 -> relu4_1  (block 3 output)
)


def _compute_vmem_limit():
    # v5e/v6e (128 MiB physical) -> ~96 MiB; v7x (64 MiB physical) -> ~48 MiB.
    try:
        cap = int(pltpu.get_tpu_info().vmem_capacity_bytes)
    except Exception:
        cap = 64 * 1024 * 1024
    return max(32 * 1024 * 1024, min(3 * cap // 4, 100 * 1024 * 1024))


_VMEM_LIMIT = _compute_vmem_limit()


# ----------------------------------------------------------------------------
# Padded-flat activation layout helpers (wrapper-side, cheap layout work only)
# ----------------------------------------------------------------------------
def _nhwc_to_padded_flat(x):
    """(N, H, W, C) -> (N, (H+2)*(W+2) + 2, C), spatially zero-padded + flattened."""
    n, h, w, c = x.shape
    xp = jnp.pad(x, ((0, 0), (1, 1), (1, 1), (0, 0)))
    xf = xp.reshape(n, (h + 2) * (w + 2), c)
    # Two extra zero rows so the (kh=2, kw=2) tap slice never runs out of rows.
    return jnp.pad(xf, ((0, 0), (0, 2), (0, 0)))


def _padded_flat_to_nhwc(xf, h, w):
    """Inverse of _nhwc_to_padded_flat (interior only): -> (N, H, W, C)."""
    n, _, c = xf.shape
    xp = xf[:, : (h + 2) * (w + 2), :].reshape(n, h + 2, w + 2, c)
    return xp[:, 1:h + 1, 1:w + 1, :]


# ----------------------------------------------------------------------------
# Fused Conv 3x3 (pad=1) + bias + ReLU kernel: 9 in-kernel taps -> 9 MXU dots
# ----------------------------------------------------------------------------
def _conv3x3_relu_kernel(x_ref, w_ref, b_ref, m_ref, o_ref, *, wpad, q):
    # x_ref: (P+2, Cin)  bf16 flat zero-padded activation of one image
    # w_ref: (9, Cin, Cout) bf16, tap-major (kh, kw) flattening
    # b_ref: (1, Cout) f32, m_ref: (q, 1) f32 junk-column mask
    # o_ref: (P+2, Cout)  next layer's flat zero-padded activation
    prow = o_ref.shape[0]
    cout = o_ref.shape[-1]

    acc = None
    for kh in range(3):
        for kw in range(3):
            off = kh * wpad + kw
            tap = x_ref[off:off + q, :]                      # static VMEM slice
            part = jnp.dot(tap, w_ref[kh * 3 + kw],
                           preferred_element_type=jnp.float32)
            acc = part if acc is None else acc + part

    y = jnp.maximum(acc + b_ref[...], 0.0)                   # f32 bias + ReLU
    y = y * m_ref[...]                                       # zero junk columns

    lead = wpad + 1                                          # top padding rows
    o_ref[:lead, :] = jnp.zeros((lead, cout), o_ref.dtype)
    o_ref[lead:lead + q, :] = y.astype(o_ref.dtype)
    o_ref[lead + q:, :] = jnp.zeros((prow - lead - q, cout), o_ref.dtype)


def conv3x3_relu_flat(xflat, w, b, h, wd, *, compute_dtype=jnp.bfloat16):
    """Fused 3x3 conv (stride 1, pad 1) + bias + ReLU on padded-flat activations.

    xflat: (N, (H+2)*(W+2)+2, Cin); w: (3, 3, Cin, Cout) HWIO; b: (Cout,).
    Returns the next layer's padded-flat activation (N, (H+2)*(W+2)+2, Cout).
    """
    xflat = xflat.astype(compute_dtype)
    n, prow, cin = xflat.shape
    cout = w.shape[-1]
    wpad = wd + 2
    q = h * wpad
    assert prow == (h + 2) * wpad + 2, (prow, h, wd)

    wmat = w.astype(compute_dtype).reshape(9, cin, cout)
    brow = b.astype(jnp.float32).reshape(1, cout)
    # Mask: 1 for interior columns, 0 for the two pad columns of each row.
    mask_np = np.tile(
        np.concatenate([np.ones((wd,), np.float32), np.zeros((2,), np.float32)]),
        h).reshape(q, 1)
    mask = jnp.asarray(mask_np)

    kernel = functools.partial(_conv3x3_relu_kernel, wpad=wpad, q=q)
    return pl.pallas_call(
        kernel,
        out_shape=jax.ShapeDtypeStruct((n, prow, cout), compute_dtype),
        grid_spec=pltpu.PrefetchScalarGridSpec(
            num_scalar_prefetch=0,
            grid=(n,),
            in_specs=[
                pl.BlockSpec((None, prow, cin), lambda i: (i, 0, 0)),
                pl.BlockSpec((9, cin, cout), lambda i: (0, 0, 0)),
                pl.BlockSpec((1, cout), lambda i: (0, 0)),
                pl.BlockSpec((q, 1), lambda i: (0, 0)),
            ],
            out_specs=pl.BlockSpec((None, prow, cout), lambda i: (i, 0, 0)),
        ),
        compiler_params=pltpu.CompilerParams(
            dimension_semantics=("parallel",),
            vmem_limit_bytes=_VMEM_LIMIT,
        ),
    )(xflat, wmat, brow, mask)


# ----------------------------------------------------------------------------
# MaxPool2d(kernel=2, stride=2)
# ----------------------------------------------------------------------------
def _maxpool2x2_kernel(x_ref, o_ref):
    # x_ref: (tr, 2, W2, 2*C) -- H-pair on axis 1, W-pair folded into lanes.
    x = x_ref[...]
    c = o_ref.shape[-1]
    hmax = jnp.maximum(x[:, 0], x[:, 1])                      # pool over H pair
    o_ref[...] = jnp.maximum(hmax[..., :c], hmax[..., c:])    # pool over W pair


def _pick_row_tile(rows, max_tile):
    # Largest divisor of `rows` that keeps >=2 grid steps (megacore) when possible.
    cap = min(max_tile, rows)
    if rows >= 2:
        cap = min(cap, max(1, rows // 2))
    for d in range(cap, 0, -1):
        if rows % d == 0:
            return d
    return 1


def maxpool2x2(x, *, row_tile=512):
    """2x2 max pool, stride 2 (floor), NHWC. x: (N, H, W, C)."""
    n, h, wd, c = x.shape
    h2, w2 = h // 2, wd // 2
    # Contiguous (free) wrapper reshape: (N, H, W, C) -> (N*H/2, 2, W/2, 2*C).
    xr = x[:, : 2 * h2, : 2 * w2, :].reshape(n * h2, 2, w2, 2 * c)
    rows = n * h2
    tr = _pick_row_tile(rows, row_tile)

    out = pl.pallas_call(
        _maxpool2x2_kernel,
        out_shape=jax.ShapeDtypeStruct((rows, w2, c), x.dtype),
        grid_spec=pltpu.PrefetchScalarGridSpec(
            num_scalar_prefetch=0,
            grid=(rows // tr,),
            in_specs=[pl.BlockSpec((tr, 2, w2, 2 * c), lambda i: (i, 0, 0, 0))],
            out_specs=pl.BlockSpec((tr, w2, c), lambda i: (i, 0, 0)),
        ),
        compiler_params=pltpu.CompilerParams(
            dimension_semantics=("parallel",),
            vmem_limit_bytes=_VMEM_LIMIT,
        ),
    )(xr)
    return out.reshape(n, h2, w2, c)


# ----------------------------------------------------------------------------
# VGGEncoder forward
# ----------------------------------------------------------------------------
def init_vgg19_encoder_params(key, dtype=jnp.float32):
    # TODO(synk): load pretrained torchvision VGG19 weights (no file/network access here).
    params = []
    for cin, cout, _, _ in _CONVS:
        key, wk, bk = jax.random.split(key, 3)
        scale = (2.0 / (9 * cin)) ** 0.5
        params.append((jax.random.normal(wk, (3, 3, cin, cout), dtype) * scale,
                       jax.random.normal(bk, (cout,), dtype) * 0.01))
    return params


def vgg_encoder_forward(x_nchw, params, *, return_last=True,
                        compute_dtype=jnp.bfloat16):
    """Mirrors VGGEncoder.forward. x_nchw: (N, 3, H, W).

    return_last=True  -> relu4_1 features, NCHW (N, 512, H/8, W/8)
    return_last=False -> [relu1_1, relu2_1, relu3_1, relu4_1], each NCHW
    """
    in_dtype = x_nchw.dtype
    x = jnp.transpose(x_nchw, (0, 2, 3, 1)).astype(compute_dtype)  # NHWC, bf16
    hh, ww = x.shape[1], x.shape[2]
    xf = _nhwc_to_padded_flat(x)

    feats = []
    for idx, (cin, cout, pool_after, block_end) in enumerate(_CONVS):
        wgt, bias = params[idx]
        xf = conv3x3_relu_flat(xf, wgt, bias, hh, ww, compute_dtype=compute_dtype)
        if block_end:
            feats.append((xf, hh, ww))
        if pool_after:
            act = _padded_flat_to_nhwc(xf, hh, ww)
            act = maxpool2x2(act)
            hh, ww = hh // 2, ww // 2
            xf = _nhwc_to_padded_flat(act)

    def to_nchw(entry):
        f, fh, fw = entry
        a = _padded_flat_to_nhwc(f, fh, fw)
        return jnp.transpose(a, (0, 3, 1, 2)).astype(in_dtype)

    if return_last:
        return to_nchw(feats[-1])
    return [to_nchw(e) for e in feats]


# ----------------------------------------------------------------------------
# Pure-JAX reference (XLA convs) mirroring the kernel's bf16/f32 precision
# ----------------------------------------------------------------------------
def _vgg_encoder_ref(x_nchw, params, *, return_last=True,
                     compute_dtype=jnp.bfloat16):
    in_dtype = x_nchw.dtype
    x = jnp.transpose(x_nchw, (0, 2, 3, 1)).astype(compute_dtype)
    feats = []
    for idx, (cin, cout, pool_after, block_end) in enumerate(_CONVS):
        w, b = params[idx]
        y = lax.conv_general_dilated(
            x, w.astype(compute_dtype), window_strides=(1, 1), padding="SAME",
            dimension_numbers=("NHWC", "HWIO", "NHWC"),
            preferred_element_type=jnp.float32)
        y = jnp.maximum(y + b.astype(jnp.float32), 0.0)
        x = y.astype(compute_dtype)
        if block_end:
            feats.append(x)
        if pool_after:
            x = lax.reduce_window(x.astype(jnp.float32), -jnp.inf, lax.max,
                                  (1, 2, 2, 1), (1, 2, 2, 1),
                                  "VALID").astype(compute_dtype)
    to_nchw = lambda f: jnp.transpose(f, (0, 3, 1, 2)).astype(in_dtype)
    if return_last:
        return to_nchw(feats[-1])
    return [to_nchw(f) for f in feats]


if __name__ == "__main__":
    key = jax.random.PRNGKey(0)
    pkey, xkey = jax.random.split(key)
    params = init_vgg19_encoder_params(pkey)

    N, C, H, W = 2, 3, 16, 16
    x = jax.random.normal(xkey, (N, C, H, W), dtype=jnp.float32)

    # return_last=True path (default of the PyTorch module).
    out = vgg_encoder_forward(x, params, return_last=True)
    out = jax.block_until_ready(out)
    assert out.shape == (N, 512, H // 8, W // 8), out.shape

    ref = _vgg_encoder_ref(x, params, return_last=True)
    ref = jax.block_until_ready(ref)
    scale = float(jnp.max(jnp.abs(ref))) + 1e-6
    rel_err = float(jnp.max(jnp.abs(out - ref))) / scale
    assert rel_err < 2e-2, rel_err

    # return_last=False path: the four block features.
    feats = vgg_encoder_forward(x, params, return_last=False)
    feats = jax.block_until_ready(feats)
    expected = [(N, 64, 16, 16), (N, 128, 8, 8), (N, 256, 4, 4), (N, 512, 2, 2)]
    assert [tuple(f.shape) for f in feats] == expected, [f.shape for f in feats]

    print("KERNEL_OK")
</pallas_src>

<mosaic_0001>
module attributes {stable_mosaic.version = 11 : i64} {
  func.func @_conv3x3_relu_kernel(%arg0: i32, %arg1: memref<1x326x3xbf16, #tpu.memory_space<vmem>>, %arg2: memref<9x3x64xbf16, #tpu.memory_space<vmem>>, %arg3: memref<1x64xf32, #tpu.memory_space<vmem>>, %arg4: memref<288x1xf32, #tpu.memory_space<vmem>>, %arg5: memref<1x326x64xbf16, #tpu.memory_space<vmem>>) attributes {dimension_semantics = [#tpu.dimension_semantics<parallel>], iteration_bounds = array<i64: 2>, scalar_prefetch = 0 : i64, scratch_operands = 0 : i64, tpu.core_type = #tpu.core_type<tc>, window_params = [{transform_indices = @transform_0, window_bounds = array<i64: 1, 326, 3>}, {pipeline_mode = #tpu.pipeline_mode<synchronous>, transform_indices = @transform_1, window_bounds = array<i64: 9, 3, 64>}, {pipeline_mode = #tpu.pipeline_mode<synchronous>, transform_indices = @transform_2, window_bounds = array<i64: 1, 64>}, {pipeline_mode = #tpu.pipeline_mode<synchronous>, transform_indices = @transform_3, window_bounds = array<i64: 288, 1>}, {transform_indices = @transform_4, window_bounds = array<i64: 1, 326, 64>}]} {
    %c0 = arith.constant 0 : index
    %c0_0 = arith.constant 0 : index
    %c0_1 = arith.constant 0 : index
    %0 = vector.load %arg1[%c0, %c0_0, %c0_1] : memref<1x326x3xbf16, #tpu.memory_space<vmem>>, vector<1x288x3xbf16>
    %1 = vector.shape_cast %0 : vector<1x288x3xbf16> to vector<288x3xbf16>
    %c0_2 = arith.constant 0 : index
    %c0_3 = arith.constant 0 : index
    %c0_4 = arith.constant 0 : index
    %2 = vector.load %arg2[%c0_2, %c0_3, %c0_4] : memref<9x3x64xbf16, #tpu.memory_space<vmem>>, vector<1x3x64xbf16>
    %3 = vector.shape_cast %2 : vector<1x3x64xbf16> to vector<3x64xbf16>
    %cst = arith.constant dense<0.000000e+00> : vector<288x64xf32>
    %4 = tpu.matmul %1, %3, %cst {dimension_numbers = #tpu.dot_dimension_numbers<[1], [0], [0], [1], [0, 0, 1, 1], [], []>} : vector<288x3xbf16>, vector<3x64xbf16>, vector<288x64xf32> -> vector<288x64xf32>
    %c0_5 = arith.constant 0 : index
    %c1 = arith.constant 1 : index
    %c0_6 = arith.constant 0 : index
    %5 = vector.load %arg1[%c0_5, %c1, %c0_6] : memref<1x326x3xbf16, #tpu.memory_space<vmem>>, vector<1x288x3xbf16>
    %6 = vector.shape_cast %5 : vector<1x288x3xbf16> to vector<288x3xbf16>
    %c1_7 = arith.constant 1 : index
    %c0_8 = arith.constant 0 : index
    %c0_9 = arith.constant 0 : index
    %7 = vector.load %arg2[%c1_7, %c0_8, %c0_9] : memref<9x3x64xbf16, #tpu.memory_space<vmem>>, vector<1x3x64xbf16>
    %8 = vector.shape_cast %7 : vector<1x3x64xbf16> to vector<3x64xbf16>
    %cst_10 = arith.constant dense<0.000000e+00> : vector<288x64xf32>
    %9 = tpu.matmul %6, %8, %cst_10 {dimension_numbers = #tpu.dot_dimension_numbers<[1], [0], [0], [1], [0, 0, 1, 1], [], []>} : vector<288x3xbf16>, vector<3x64xbf16>, vector<288x64xf32> -> vector<288x64xf32>
    %10 = arith.addf %4, %9 : vector<288x64xf32>
    %c0_11 = arith.constant 0 : index
    %c2 = arith.constant 2 : index
    %c0_12 = arith.constant 0 : index
    %11 = vector.load %arg1[%c0_11, %c2, %c0_12] : memref<1x326x3xbf16, #tpu.memory_space<vmem>>, vector<1x288x3xbf16>
    %12 = vector.shape_cast %11 : vector<1x288x3xbf16> to vector<288x3xbf16>
    %c2_13 = arith.constant 2 : index
    %c0_14 = arith.constant 0 : index
    %c0_15 = arith.constant 0 : index
    %13 = vector.load %arg2[%c2_13, %c0_14, %c0_15] : memref<9x3x64xbf16, #tpu.memory_space<vmem>>, vector<1x3x64xbf16>
    %14 = vector.shape_cast %13 : vector<1x3x64xbf16> to vector<3x64xbf16>
    %cst_16 = arith.constant dense<0.000000e+00> : vector<288x64xf32>
    %15 = tpu.matmul %12, %14, %cst_16 {dimension_numbers = #tpu.dot_dimension_numbers<[1], [0], [0], [1], [0, 0, 1, 1], [], []>} : vector<288x3xbf16>, vector<3x64xbf16>, vector<288x64xf32> -> vector<288x64xf32>
    %16 = arith.addf %10, %15 : vector<288x64xf32>
    %c0_17 = arith.constant 0 : index
    %c18 = arith.constant 18 : index
    %c0_18 = arith.constant 0 : index
    %17 = vector.load %arg1[%c0_17, %c18, %c0_18] : memref<1x326x3xbf16, #tpu.memory_space<vmem>>, vector<1x288x3xbf16>
    %18 = vector.shape_cast %17 : vector<1x288x3xbf16> to vector<288x3xbf16>
    %c3 = arith.constant 3 : index
    %c0_19 = arith.constant 0 : index
    %c0_20 = arith.constant 0 : index
    %19 = vector.load %arg2[%c3, %c0_19, %c0_20] : memref<9x3x64xbf16, #tpu.memory_space<vmem>>, vector<1x3x64xbf16>
    %20 = vector.shape_cast %19 : vector<1x3x64xbf16> to vector<3x64xbf16>
    %cst_21 = arith.constant dense<0.000000e+00> : vector<288x64xf32>
    %21 = tpu.matmul %18, %20, %cst_21 {dimension_numbers = #tpu.dot_dimension_numbers<[1], [0], [0], [1], [0, 0, 1, 1], [], []>} : vector<288x3xbf16>, vector<3x64xbf16>, vector<288x64xf32> -> vector<288x64xf32>
    %22 = arith.addf %16, %21 : vector<288x64xf32>
    %c0_22 = arith.constant 0 : index
    %c19 = arith.constant 19 : index
    %c0_23 = arith.constant 0 : index
    %23 = vector.load %arg1[%c0_22, %c19, %c0_23] : memref<1x326x3xbf16, #tpu.memory_space<vmem>>, vector<1x288x3xbf16>
    %24 = vector.shape_cast %23 : vector<1x288x3xbf16> to vector<288x3xbf16>
    %c4 = arith.constant 4 : index
    %c0_24 = arith.constant 0 : index
    %c0_25 = arith.constant 0 : index
    %25 = vector.load %arg2[%c4, %c0_24, %c0_25] : memref<9x3x64xbf16, #tpu.memory_space<vmem>>, vector<1x3x64xbf16>
    %26 = vector.shape_cast %25 : vector<1x3x64xbf16> to vector<3x64xbf16>
    %cst_26 = arith.constant dense<0.000000e+00> : vector<288x64xf32>
    %27 = tpu.matmul %24, %26, %cst_26 {dimension_numbers = #tpu.dot_dimension_numbers<[1], [0], [0], [1], [0, 0, 1, 1], [], []>} : vector<288x3xbf16>, vector<3x64xbf16>, vector<288x64xf32> -> vector<288x64xf32>
    %28 = arith.addf %22, %27 : vector<288x64xf32>
    %c0_27 = arith.constant 0 : index
    %c20 = arith.constant 20 : index
    %c0_28 = arith.constant 0 : index
    %29 = vector.load %arg1[%c0_27, %c20, %c0_28] : memref<1x326x3xbf16, #tpu.memory_space<vmem>>, vector<1x288x3xbf16>
    %30 = vector.shape_cast %29 : vector<1x288x3xbf16> to vector<288x3xbf16>
    %c5 = arith.constant 5 : index
    %c0_29 = arith.constant 0 : index
    %c0_30 = arith.constant 0 : index
    %31 = vector.load %arg2[%c5, %c0_29, %c0_30] : memref<9x3x64xbf16, #tpu.memory_space<vmem>>, vector<1x3x64xbf16>
    %32 = vector.shape_cast %31 : vector<1x3x64xbf16> to vector<3x64xbf16>
    %cst_31 = arith.constant dense<0.000000e+00> : vector<288x64xf32>
    %33 = tpu.matmul %30, %32, %cst_31 {dimension_numbers = #tpu.dot_dimension_numbers<[1], [0], [0], [1], [0, 0, 1, 1], [], []>} : vector<288x3xbf16>, vector<3x64xbf16>, vector<288x64xf32> -> vector<288x64xf32>
    %34 = arith.addf %28, %33 : vector<288x64xf32>
    %c0_32 = arith.constant 0 : index
    %c36 = arith.constant 36 : index
    %c0_33 = arith.constant 0 : index
    %35 = vector.load %arg1[%c0_32, %c36, %c0_33] : memref<1x326x3xbf16, #tpu.memory_space<vmem>>, vector<1x288x3xbf16>
    %36 = vector.shape_cast %35 : vector<1x288x3xbf16> to vector<288x3xbf16>
    %c6 = arith.constant 6 : index
    %c0_34 = arith.constant 0 : index
    %c0_35 = arith.constant 0 : index
    %37 = vector.load %arg2[%c6, %c0_34, %c0_35] : memref<9x3x64xbf16, #tpu.memory_space<vmem>>, vector<1x3x64xbf16>
    %38 = vector.shape_cast %37 : vector<1x3x64xbf16> to vector<3x64xbf16>
    %cst_36 = arith.constant dense<0.000000e+00> : vector<288x64xf32>
    %39 = tpu.matmul %36, %38, %cst_36 {dimension_numbers = #tpu.dot_dimension_numbers<[1], [0], [0], [1], [0, 0, 1, 1], [], []>} : vector<288x3xbf16>, vector<3x64xbf16>, vector<288x64xf32> -> vector<288x64xf32>
    %40 = arith.addf %34, %39 : vector<288x64xf32>
    %c0_37 = arith.constant 0 : index
    %c37 = arith.constant 37 : index
    %c0_38 = arith.constant 0 : index
    %41 = vector.load %arg1[%c0_37, %c37, %c0_38] : memref<1x326x3xbf16, #tpu.memory_space<vmem>>, vector<1x288x3xbf16>
    %42 = vector.shape_cast %41 : vector<1x288x3xbf16> to vector<288x3xbf16>
    %c7 = arith.constant 7 : index
    %c0_39 = arith.constant 0 : index
    %c0_40 = arith.constant 0 : index
    %43 = vector.load %arg2[%c7, %c0_39, %c0_40] : memref<9x3x64xbf16, #tpu.memory_space<vmem>>, vector<1x3x64xbf16>
    %44 = vector.shape_cast %43 : vector<1x3x64xbf16> to vector<3x64xbf16>
    %cst_41 = arith.constant dense<0.000000e+00> : vector<288x64xf32>
    %45 = tpu.matmul %42, %44, %cst_41 {dimension_numbers = #tpu.dot_dimension_numbers<[1], [0], [0], [1], [0, 0, 1, 1], [], []>} : vector<288x3xbf16>, vector<3x64xbf16>, vector<288x64xf32> -> vector<288x64xf32>
    %46 = arith.addf %40, %45 : vector<288x64xf32>
    %c0_42 = arith.constant 0 : index
    %c38 = arith.constant 38 : index
    %c0_43 = arith.constant 0 : index
    %47 = vector.load %arg1[%c0_42, %c38, %c0_43] : memref<1x326x3xbf16, #tpu.memory_space<vmem>>, vector<1x288x3xbf16>
    %48 = vector.shape_cast %47 : vector<1x288x3xbf16> to vector<288x3xbf16>
    %c8 = arith.constant 8 : index
    %c0_44 = arith.constant 0 : index
    %c0_45 = arith.constant 0 : index
    %49 = vector.load %arg2[%c8, %c0_44, %c0_45] : memref<9x3x64xbf16, #tpu.memory_space<vmem>>, vector<1x3x64xbf16>
    %50 = vector.shape_cast %49 : vector<1x3x64xbf16> to vector<3x64xbf16>
    %cst_46 = arith.constant dense<0.000000e+00> : vector<288x64xf32>
    %51 = tpu.matmul %48, %50, %cst_46 {dimension_numbers = #tpu.dot_dimension_numbers<[1], [0], [0], [1], [0, 0, 1, 1], [], []>} : vector<288x3xbf16>, vector<3x64xbf16>, vector<288x64xf32> -> vector<288x64xf32>
    %52 = arith.addf %46, %51 : vector<288x64xf32>
    %c0_47 = arith.constant 0 : index
    %c0_48 = arith.constant 0 : index
    %53 = vector.load %arg3[%c0_47, %c0_48] : memref<1x64xf32, #tpu.memory_space<vmem>>, vector<1x64xf32>
    %54 = vector.broadcast %53 : vector<1x64xf32> to vector<288x64xf32>
    %55 = arith.addf %52, %54 : vector<288x64xf32>
    %cst_49 = arith.constant 0.000000e+00 : f32
    %56 = vector.broadcast %cst_49 : f32 to vector<288x64xf32>
    %57 = arith.maximumf %55, %56 : vector<288x64xf32>
    %c0_50 = arith.constant 0 : index
    %c0_51 = arith.constant 0 : index
    %58 = vector.load %arg4[%c0_50, %c0_51] : memref<288x1xf32, #tpu.memory_space<vmem>>, vector<288x1xf32>
    %59 = vector.broadcast %58 : vector<288x1xf32> to vector<288x64xf32>
    %60 = arith.mulf %57, %59 : vector<288x64xf32>
    %cst_52 = arith.constant 0.000000e+00 : bf16
    %61 = vector.broadcast %cst_52 : bf16 to vector<19x64xbf16>
    %c0_53 = arith.constant 0 : index
    %c0_54 = arith.constant 0 : index
    %c0_55 = arith.constant 0 : index
    %62 = vector.load %arg5[%c0_53, %c0_54, %c0_55] : memref<1x326x64xbf16, #tpu.memory_space<vmem>>, vector<1x19x64xbf16>
    %63 = vector.shape_cast %62 : vector<1x19x64xbf16> to vector<19x64xbf16>
    %64 = vector.shape_cast %61 : vector<19x64xbf16> to vector<1x19x64xbf16>
    tpu.vector_store %arg5[%c0_53, %c0_54, %c0_55], %64 {strides = array<i32>} : memref<1x326x64xbf16, #tpu.memory_space<vmem>>, vector<1x19x64xbf16>,
    %65 = arith.truncf %60 : vector<288x64xf32> to vector<288x64xbf16>
    %c0_56 = arith.constant 0 : index
    %c19_57 = arith.constant 19 : index
    %c0_58 = arith.constant 0 : index
    %66 = vector.load %arg5[%c0_56, %c19_57, %c0_58] : memref<1x326x64xbf16, #tpu.memory_space<vmem>>, vector<1x288x64xbf16>
    %67 = vector.shape_cast %66 : vector<1x288x64xbf16> to vector<288x64xbf16>
    %68 = vector.shape_cast %65 : vector<288x64xbf16> to vector<1x288x64xbf16>
    tpu.vector_store %arg5[%c0_56, %c19_57, %c0_58], %68 {strides = array<i32>} : memref<1x326x64xbf16, #tpu.memory_space<vmem>>, vector<1x288x64xbf16>,
    %cst_59 = arith.constant 0.000000e+00 : bf16
    %69 = vector.broadcast %cst_59 : bf16 to vector<19x64xbf16>
    %c0_60 = arith.constant 0 : index
    %c307 = arith.constant 307 : index
    %c0_61 = arith.constant 0 : index
    %70 = vector.load %arg5[%c0_60, %c307, %c0_61] : memref<1x326x64xbf16, #tpu.memory_space<vmem>>, vector<1x19x64xbf16>
    %71 = vector.shape_cast %70 : vector<1x19x64xbf16> to vector<19x64xbf16>
    %72 = vector.shape_cast %69 : vector<19x64xbf16> to vector<1x19x64xbf16>
    tpu.vector_store %arg5[%c0_60, %c307, %c0_61], %72 {strides = array<i32>} : memref<1x326x64xbf16, #tpu.memory_space<vmem>>, vector<1x19x64xbf16>,
    return
  }
  func.func @transform_0(%arg0: i32) -> (i32, i32, i32) {
    %c0_i32 = arith.constant 0 : i32
    %c0_i32_0 = arith.constant 0 : i32
    %c0_i32_1 = arith.constant 0 : i32
    return %arg0, %c0_i32, %c0_i32_0 : i32, i32, i32
  }
  func.func @transform_1(%arg0: i32) -> (i32, i32, i32) {
    %c0_i32 = arith.constant 0 : i32
    %c0_i32_0 = arith.constant 0 : i32
    %c0_i32_1 = arith.constant 0 : i32
    %c0_i32_2 = arith.constant 0 : i32
    return %c0_i32, %c0_i32_0, %c0_i32_1 : i32, i32, i32
  }
  func.func @transform_2(%arg0: i32) -> (i32, i32) {
    %c0_i32 = arith.constant 0 : i32
    %c0_i32_0 = arith.constant 0 : i32
    %c0_i32_1 = arith.constant 0 : i32
    return %c0_i32, %c0_i32_0 : i32, i32
  }
  func.func @transform_3(%arg0: i32) -> (i32, i32) {
    %c0_i32 = arith.constant 0 : i32
    %c0_i32_0 = arith.constant 0 : i32
    %c0_i32_1 = arith.constant 0 : i32
    return %c0_i32, %c0_i32_0 : i32, i32
  }
  func.func @transform_4(%arg0: i32) -> (i32, i32, i32) {
    %c0_i32 = arith.constant 0 : i32
    %c0_i32_0 = arith.constant 0 : i32
    %c0_i32_1 = arith.constant 0 : i32
    return %arg0, %c0_i32, %c0_i32_0 : i32, i32, i32
  }
}

</mosaic_0001>

<bundles_post_ra>
// kernel: tpu_custom_call.1
= control target key start
LH: loop header
LB: loop body
LE: loop exit
PB: predicated region body
PF: predicated region fallthrough
CT: control target
= control target key end

     0   :  { %s5839_s15 = smov 0   ;;  %s7185_s0 = inlined_call_operand.vmem [shape: bf16[2,326,3], index: 0, kind: input, shape index: {}]   ;;  %s7186_s1 = inlined_call_operand.vmem [shape: bf16[9,3,64], index: 1, kind: input, shape index: {}]   ;;  %s7187_s2 = inlined_call_operand.vmem [shape: f32[1,64], index: 2, kind: input, shape index: {}]   ;;  %s7188_s3 = inlined_call_operand.vmem [shape: f32[288,1], index: 3, kind: input, shape index: {}]   ;;  %s7189_s4 = inlined_call_operand.vmem [shape: bf16[2,326,64], index: 4, kind: output, shape index: {}]  }
   0x1 LB: > { %s4601_s16 = sadd.s32 4294967295, %s5810_s15   ;;  %p4605_p0 = scmp.ge.s32.totalorder %s5810_s15, 1  ;;  %s5810_s15 = sphi %s5839_s15, %s14_s15  }
   0x2   : > { %p162_p1 = scmp.lt.s32.totalorder %s5810_s15, 3 }
   0x4   : > { %p163_p2 = pnand %p4605_p0, %p162_p1 }
   0x5   : > { %vm536_vm0 = vcmask (!%p163_p2), 1040384   ;;  %vm537_vm1 = vcmask (!%p163_p2), 1041408   ;;  %v4722_v0 = vld [vmem:[%s7186_s1 + $0x8] sm:$0x3] (!%p163_p2)  ;;  %p188_p3 = scmp.lt.s32.totalorder (!%p163_p2), %s4601_s16, 1  ;;  %v5812_v1 = vmov (!%p163_p2), 65535  }
   0x6   : > { %166 = sbr.rel (%p163_p2) target bundleno = 627 (0x273), region = 36  ;;  %v538_v2 = vsel (!%p163_p2), %vm536_vm0, 4294967295, %v5812_v1  ;;  %v4608_v3 = vld [vmem:[%s7186_s1 + $0x2] sm:$0x3] (!%p163_p2)  ;;  %v4742_v5 = vld [vmem:[%s7186_s1 + $0xa] sm:$0x3] (!%p163_p2) }
   0x7   : > { %v5853_v4 = vsel (!%p163_p2), %vm537_vm1, %v538_v2, 0  ;;  %v235_v9 = vld [vmem:[%s7186_s1] sm:$0x3] (!%p163_p2)  ;;  %vm332_vm2 = vsmask.f32 (!%p163_p2), 7424  ;;  %vm481_vm3 = vcmask (!%p163_p2), 23552  }
   0x8   : > { %v5861_v6 = vand.u32 (!%p163_p2), %v4722_v0, %v5853_v4  ;;  %v541_v7 = vand.u32 (!%p163_p2), %v4608_v3, %v5853_v4  ;;  %v5865_v8 = vand.u32 (!%p163_p2), %v4742_v5, %v5853_v4  ;;  %v5872_v10 = vand.u32 (!%p163_p2), %v5853_v4, %v235_v9  ;;  %v4762_v11 = vld [vmem:[%s7186_s1 + $0xc] sm:$0x3] (!%p163_p2)  ;;  %v4664_v17 = vld [vmem:[%s7186_s1 + $0x4] sm:$0x3] (!%p163_p2) }
   0x9   : > { %vm1695_vm4 = vsmask.f32 (!%p163_p2), 6400  ;;  %v5919_v26 = vand.u32 (!%p163_p2), %v4762_v11, %v5853_v4  ;;  %v5930_v35 = vand.u32 (!%p163_p2), %v4664_v17, %v5853_v4  ;;  %vm2142_vm5 = vcmask (!%p163_p2), 1045504  }
   0xa   : > { %5238 = vmatprep.subr.bf16.mxu0 (!%p163_p2), %v5861_v6  ;;  %5086 = vmatprep.subr.bf16.mxu1 (!%p163_p2), %v541_v7  ;;  %vm942_vm6 = vcmask (!%p163_p2), 1046528   ;;  %vm3981_vm7 = vcmask (!%p163_p2), 519168   ;;  %vm4544_vm8 = vcmask (!%p163_p2), 518144   ;;  %vm2895_vm9 = vsmask.f32 (!%p163_p2), 5376 }
   0xb   : > { %5239 = vmatpush3.bf16.msra.mxu0 (!%p163_p2), %v5861_v6  ;;  %5087 = vmatpush3.bf16.msra.mxu1 (!%p163_p2), %v541_v7  ;;  %vm3342_vm10 = vcmask (!%p163_p2), 1044480   ;;  %vm3984_vm11 = vcmask (!%p163_p2), 517120   ;;  %vm3985_vm12 = vsmask.f32 (!%p163_p2), 1280  ;;  %vm4496_vm14 = vcmask (!%p163_p2), 519169  }
   0xc   : > { %5276 = vmatprep.subr.bf16.mxu0 (!%p163_p2), %v5865_v8  ;;  %5124 = vmatprep.subr.bf16.mxu1 (!%p163_p2), %v5872_v10  ;;  %vm6774_vm13 = vmand (!%p163_p2), %vm3984_vm11, %vm3985_vm12  ;;  %vm4497_vm15 = vsmask.f32 (!%p163_p2), 7942  ;;  %vm4098_vm0 = vsmask.f32 (!%p163_p2), 5392 }
   0xd   : > { %s7197_s16 = smov (!%p188_p3, %s4601_s16), 1  ;;  %vm6825_vm1 = vmand %vm4496_vm14, %vm4497_vm15 }
   0xe   : > { %s5718_s25 = smul.u32 164, %s7197_s16 }
  0x10   : > { %s5881_s28 = scalar_lea.vmem %s7185_s0, %s5718_s25  ;;  %s6375_s17 = scalar_lea.vmem %s7189_s4, %s5718_s25 }
  0x11   : > { %v199_v12 = vld [vmem:[%s5881_s28] sm:$0xf]  ;;  %v5888_v13 = vld [vmem:[%s5881_s28 + $0x4] sm:$0xf]  ;;  %v5896_v15 = vld [vmem:[%s5881_s28 + $0x8] sm:$0xff]  }
  0x12   : > { %v5893_v14 = vcombine.low %v199_v12, %v5888_v13  ;;  %v1250_v16 = vld [vmem:[%s5881_s28 + $0x8] sm:$0xe]  ;;  %v5903_v18 = vld [vmem:[%s5881_s28 + $0xc] sm:$0xf]  ;;  %v341_v21 = vshll.u32 %v5896_v15, 16  ;;  %v345_v22 = vshrl.u32 %v5896_v15, 16 }
  0x13   : > { %v5910_v23 = vld [vmem:[%s5881_s28 + $0x10] sm:$0xff]   ;;  %v5916_v25 = vcombine.low %v1250_v16, %v5903_v18  ;;  %v5927_v34 = vld [vmem:[%s5881_s28 + $0x18] sm:$0xff]   ;;  %v5936_v41 = vld [vmem:[%s5881_s28 + $0x20] sm:$0xff]  }
  0x14   : > { %v334_v19 = vshrl.u32 %v5893_v14, 16  ;;  %v336_v20 = vshll.u32 %v5893_v14, 16  ;;  %v5913_v24 = vld [vmem:[%s5881_s28 + $0x10] sm:$0xff]   ;;  %v343_v28 = vrot.slane %v341_v21, 1  ;;  %v1705_v29 = vshrl.u32 %v5910_v23, 16  ;;  %v5933_v40 = vld [vmem:[%s5881_s28 + $0x18] sm:$0xff]  }
  0x15   : > { %v1708_v30 = vshll.u32 %v5910_v23, 16  ;;  %v1697_v31 = vshrl.u32 %v5916_v25, 16  ;;  %v1700_v32 = vshll.u32 %v5916_v25, 16  ;;  %v349_v33 = vshll.u32 %v5913_v24, 16  ;;  %v5946_v54 = vld [vmem:[%s5881_s28 + $0x20] sm:$0xff]   ;;  %v5949_v55 = vld [vmem:[%s5881_s28 + $0x28] sm:$0xff]  }
  0x16   : > { %v338_v27 = vrot.slane %v336_v20, 1  ;;  %v347_v37 = vor.u32 %v345_v22, %v343_v28  ;;  %v1707_v38 = vrot.slane %v1705_v29, 1  ;;  %v1714_v45 = vshrl.u32 %v5927_v34, 16  ;;  %v5955_v60 = vld [vmem:[%s5881_s28 + $0x28] sm:$0xff]   ;;  %v5962_v1 = vld [vmem:[%s5881_s28 + $0x30] sm:$0xff]  }
  0x17   : > { %v1710_v39 = vrot.slane %v1708_v30, 2  ;;  %v1699_v42 = vrot.slane %v1697_v31, 1  ;;  %v1702_v43 = vrot.slane %v1700_v32, 2  ;;  %v351_v44 = vrot.slane %v349_v33, 1  ;;  %v5967_v9 = vld [vmem:[%s5881_s28 + $0x30] sm:$0xff]   ;;  %v5980_v30 = vld [vmem:[%s5881_s28 + $0x38] sm:$0xff]  }
  0x18   : > { %v339_v36 = vor.u32 %v338_v27, %v334_v19  ;;  %v1717_v48 = vshll.u32 %v5927_v34, 16  ;;  %v353_v49 = vshrl.u32 %v5913_v24, 16  ;;  %v1716_v52 = vrot.slane %v1714_v45, 1 }
  0x19   : > { %v1711_v47 = vor.u32 %v1710_v39, %v1707_v38  ;;  %v1703_v50 = vor.u32 %v1702_v43, %v1699_v42  ;;  %v352_v51 = vsel %vm332_vm2, %v347_v37, %v351_v44  ;;  %v357_v53 = vshll.u32 %v5933_v40, 16  ;;  %v5989_v43 = vld [vmem:[%s5881_s28 + $0x38] sm:$0xff]  }
  0x1a   : > { %v344_v46 = vsel %vm332_vm2, %v339_v36, %v343_v28  ;;  %v1719_v56 = vrot.slane %v1717_v48, 2  ;;  %v355_v57 = vor.u32 %v353_v49, %v351_v44  ;;  %v1723_v58 = vshrl.u32 %v5936_v41, 16 }
  0x1b   : > { %5088 = vmatprep.mubr.msk.bf16.mxu1 %vm481_vm3, %v344_v46  ;;  %v1726_v59 = vshll.u32 %v5936_v41, 16  ;;  %v1712_v61 = vsel %vm1695_vm4, %v1703_v50, %v1711_v47  ;;  %v359_v62 = vrot.slane %v357_v53, 1  ;;  %v361_v63 = vshrl.u32 %v5933_v40, 16 }
  0x1c   : > { %5089 = vmatmul.mubr.msk.bf16.vlgmr.msra.gmra.mrb[0].mxu1 %vm481_vm3, %v352_v51  ;;  %v365_v0 = vshll.u32 %v5946_v54, 16  ;;  %5240 = vmatprep.mubr.msk.bf16.mxu0 %vm481_vm3, %v1712_v61  ;;  %v1720_v2 = vor.u32 %v1719_v56, %v1716_v52  ;;  %v1725_v3 = vrot.slane %v1723_v58, 1  ;;  %v1732_v7 = vshrl.u32 %v5949_v55, 16  ;;  %v5999_v51 = vld [vmem:[%s5881_s28 + $0x40] sm:$0xff]  }
  0x1d   : > { %5125 = vmatpush3.bf16.msra.mxu1 %v5872_v10  ;;  %v1728_v5 = vrot.slane %v1726_v59, 2  ;;  %v360_v11 = vsel %vm332_vm2, %v355_v57, %v359_v62  ;;  %v363_v12 = vor.u32 %v361_v63, %v359_v62  ;;  %v1735_v10 = vshll.u32 %v5949_v55, 16  ;;  %v6004_v58 = vld [vmem:[%s5881_s28 + $0x40] sm:$0xff]  }
  0x1e   : > { %5162 = vmatprep.subr.bf16.mxu1 %v5930_v35  ;;  %v367_v16 = vrot.slane %v365_v0, 1  ;;  %v1721_v17 = vsel %vm1695_vm4, %v1711_v47, %v1720_v2  ;;  %5092 = vmatprep.mubr.msk.bf16.mxu1 %vm481_vm3, %v360_v11  ;;  %v1734_v20 = vrot.slane %v1732_v7, 1  ;;  %v369_v21 = vshrl.u32 %v5946_v54, 16  ;;  %v6012_v7 = vld [vmem:[%s5881_s28 + $0x48] sm:$0xff]  }
  0x1f   : > { %v1729_v19 = vor.u32 %v1728_v5, %v1725_v3  ;;  %5241 = vmatmul.mubr.msk.bf16.vlgmr.msra.gmra.mrb[0].mxu0 %vm481_vm3, %v1721_v17  ;;  %v1737_v27 = vrot.slane %v1735_v10, 2  ;;  %v373_v28 = vshll.u32 %v5955_v60, 16  ;;  %v1741_v29 = vshrl.u32 %v5962_v1, 16  ;;  %v6015_v11 = vld [vmem:[%s5881_s28 + $0x48] sm:$0xff]  }
  0x20   : > { %v368_v22 = vsel %vm332_vm2, %v363_v12, %v367_v16  ;;  %5277 = vmatpush3.bf16.msra.mxu0 %v5865_v8  ;;  %v371_v32 = vor.u32 %v369_v21, %v367_v16  ;;  %v1744_v33 = vshll.u32 %v5962_v1, 16  ;;  %v377_v36 = vshrl.u32 %v5955_v60, 16  ;;  %v6024_v21 = vld [vmem:[%s5881_s28 + $0x50] sm:$0xff]  }
  0x21   : > { %v1730_v31 = vsel %vm1695_vm4, %v1720_v2, %v1729_v19  ;;  %v1738_v37 = vor.u32 %v1737_v27, %v1734_v20  ;;  %v375_v38 = vrot.slane %v373_v28, 1  ;;  %v1743_v39 = vrot.slane %v1741_v29, 1  ;;  %5314 = vmatprep.subr.bf16.mxu0 %v5919_v26 }
  0x22   : > { %5244 = vmatprep.mubr.msk.bf16.mxu0 %vm481_vm3, %v1730_v31  ;;  %v381_v42 = vshll.u32 %v5967_v9, 16  ;;  %v1746_v8 = vrot.slane %v1744_v33, 2  ;;  %v1750_v44 = vshrl.u32 %v5980_v30, 16  ;;  %v1753_v45 = vshll.u32 %v5980_v30, 16  ;;  %v6032_v33 = vld [vmem:[%s5881_s28 + $0x50] sm:$0xff]  }
  0x23   : > { %v385_v46 = vshrl.u32 %v5967_v9, 16  ;;  %v1739_v47 = vsel %vm1695_vm4, %v1729_v19, %v1738_v37  ;;  %v376_v48 = vsel %vm332_vm2, %v371_v32, %v375_v38  ;;  %v379_v49 = vor.u32 %v377_v36, %v375_v38  ;;  %v6037_v38 = vld [vmem:[%s5881_s28 + $0x58] sm:$0xff]  }
  0x24   : > { %5093 = vmatmul.mubr.msk.bf16.gmra.mrb[4].mxu1 %vm481_vm3, %v368_v22  ;;  %v383_v50 = vrot.slane %v381_v42, 1  ;;  %v1747_v52 = vor.u32 %v1746_v8, %v1743_v39  ;;  %v1752_v53 = vrot.slane %v1750_v44, 1  ;;  %v1755_v56 = vrot.slane %v1753_v45, 2 }
  0x25   : > { %5096 = vmatprep.mubr.msk.bf16.mxu1 %vm481_vm3, %v376_v48  ;;  %v389_v57 = vshll.u32 %v5989_v43, 16  ;;  %v1759_v62 = vshrl.u32 %v5999_v51, 16  ;;  %v1762_v63 = vshll.u32 %v5999_v51, 16  ;;  %v393_v5 = vshrl.u32 %v5989_v43, 16 }
  0x26   : > { %v384_v59 = vsel %vm332_vm2, %v379_v49, %v383_v50  ;;  %v387_v61 = vor.u32 %v385_v46, %v383_v50  ;;  %v1748_v0 = vsel %vm1695_vm4, %v1738_v37, %v1747_v52  ;;  %v1756_v2 = vor.u32 %v1755_v56, %v1752_v53  ;;  %v6042_v49 = vld [vmem:[%s5881_s28 + $0x58] sm:$0xff]  }
  0x27   : > { %v391_v3 = vrot.slane %v389_v57, 1  ;;  %5245 = vmatmul.mubr.msk.bf16.gmra.mrb[4].mxu0 %vm481_vm3, %v1739_v47  ;;  %v1761_v12 = vrot.slane %v1759_v62, 1  ;;  %v1764_v16 = vrot.slane %v1762_v63, 2  ;;  %v397_v10 = vshll.u32 %v6004_v58, 16 }
  0x28   : > { %v401_v17 = vshrl.u32 %v6004_v58, 16  ;;  %5248 = vmatprep.mubr.msk.bf16.mxu0 %vm481_vm3, %v1748_v0  ;;  %v1768_v20 = vshrl.u32 %v6012_v7, 16  ;;  %v1771_v27 = vshll.u32 %v6012_v7, 16  ;;  %v405_v28 = vshll.u32 %v6015_v11, 16 }
  0x29   : > { %v392_v19 = vsel %vm332_vm2, %v387_v61, %v391_v3  ;;  %v1765_v22 = vor.u32 %v1764_v16, %v1761_v12  ;;  %v399_v29 = vrot.slane %v397_v10, 1  ;;  %v1777_v31 = vshrl.u32 %v6024_v21, 16 }
  0x2a   : > { %v1780_v32 = vshll.u32 %v6024_v21, 16  ;;  %v1757_v36 = vsel %vm1695_vm4, %v1747_v52, %v1756_v2  ;;  %v395_v37 = vor.u32 %v393_v5, %v391_v3  ;;  %v1770_v39 = vrot.slane %v1768_v20, 1  ;;  %v6056_v3 = vld [vmem:[%s5881_s28 + $0x60] sm:$0xff]   ;;  %v6061_v20 = vld [vmem:[%s5881_s28 + $0x68] sm:$0xff]  }
  0x2b   : > { %v1773_v42 = vrot.slane %v1771_v27, 2  ;;  %v403_v8 = vor.u32 %v401_v17, %v399_v29  ;;  %v407_v44 = vrot.slane %v405_v28, 1  ;;  %v1766_v45 = vsel %vm1695_vm4, %v1756_v2, %v1765_v22  ;;  %v2136_v2 = vld [vmem:[%s5881_s28 + $0x8] sm:$0xc] }
  0x2c   : > { %5097 = vmatmul.mubr.msk.bf16.gmra.mrb[8].mxu1 %vm481_vm3, %v384_v59  ;;  %v1779_v46 = vrot.slane %v1777_v31, 1  ;;  %v1782_v47 = vrot.slane %v1780_v32, 2  ;;  %v413_v48 = vshll.u32 %v6032_v33, 16  ;;  %v400_v50 = vsel %vm332_vm2, %v395_v37, %v399_v29 }
  0x2d   : > { %5100 = vmatprep.mubr.msk.bf16.mxu1 %vm481_vm3, %v392_v19  ;;  %v409_v52 = vshrl.u32 %v6015_v11, 16  ;;  %v1786_v53 = vshrl.u32 %v6037_v38, 16  ;;  %v1789_v56 = vshll.u32 %v6037_v38, 16  ;;  %v1774_v57 = vor.u32 %v1773_v42, %v1770_v39 }
  0x2e   : > { %v408_v59 = vsel %vm332_vm2, %v403_v8, %v407_v44  ;;  %v417_v61 = vshrl.u32 %v6032_v33, 16  ;;  %v421_v62 = vshll.u32 %v6042_v49, 16  ;;  %v1783_v63 = vor.u32 %v1782_v47, %v1779_v46 }
  0x2f   : > { %5249 = vmatmul.mubr.msk.bf16.gmra.mrb[8].mxu0 %vm481_vm3, %v1757_v36  ;;  %v415_v0 = vrot.slane %v413_v48, 1  ;;  %v411_v5 = vor.u32 %v409_v52, %v407_v44  ;;  %v1788_v12 = vrot.slane %v1786_v53, 1  ;;  %v1791_v16 = vrot.slane %v1789_v56, 2  ;;  %v6078_v44 = vld [vmem:[%s5881_s28 + $0x70] sm:$0xff]  }
  0x30   : > { %5252 = vmatprep.mubr.msk.bf16.mxu0 %vm481_vm3, %v1766_v45  ;;  %v1775_v10 = vsel %vm1695_vm4, %v1765_v22, %v1774_v57  ;;  %v423_v19 = vrot.slane %v421_v62, 1  ;;  %v1784_v27 = vsel %vm1695_vm4, %v1774_v57, %v1783_v63  ;;  %v4743_v28 = vcombine.low %v2136_v2, %v5903_v18  ;;  %v6099_v2 = vld [vmem:[%s5881_s28 + $0x80] sm:$0xff]  }
  0x31   : > { %v419_v17 = vor.u32 %v417_v61, %v415_v0  ;;  %v429_v29 = vshll.u32 %v6056_v3, 16  ;;  %v416_v31 = vsel %vm332_vm2, %v411_v5, %v415_v0  ;;  %v425_v32 = vshrl.u32 %v6042_v49, 16 }
  0x32   : > { %v6070_v22 = vor.u32 %v1791_v16, %v1788_v12  ;;  %v433_v37 = vshrl.u32 %v6056_v3, 16  ;;  %v437_v39 = vshll.u32 %v6061_v20, 16  ;;  %v2143_v18 = vrot.slane %v4743_v28, 2 }
  0x33   : > { %v424_v36 = vsel %vm332_vm2, %v419_v17, %v423_v19  ;;  %v2144_v42 = vrot.slane %v5910_v23, 2  ;;  %v431_v8 = vrot.slane %v429_v29, 1  ;;  %v427_v45 = vor.u32 %v425_v32, %v423_v19  ;;  %v6107_v17 = vld [vmem:[%s5881_s28 + $0x88] sm:$0xff]  }
  0x34   : > { %5101 = vmatmul.mubr.msk.bf16.gmra.mrb[12].mxu1 %vm481_vm3, %v400_v50  ;;  %v1793_v46 = vsel %vm1695_vm4, %v1783_v63, %v6070_v22  ;;  %v439_v48 = vrot.slane %v437_v39, 1  ;;  %v6084_v50 = vld [vmem:[%s5881_s28 + $0x78] sm:$0xff]   ;;  %v445_v23 = vshll.u32 %v6078_v44, 16  ;;  %v2146_v56 = vrot.slane %v5927_v34, 2  ;;  %v4800_v34 = vld [vmem:[%s7186_s1 + $0xe] sm:$0x3] }
  0x35   : > { %5104 = vmatprep.mubr.msk.bf16.mxu1 %vm481_vm3, %v408_v59  ;;  %v435_v47 = vor.u32 %v433_v37, %v431_v8  ;;  %v2145_v52 = vsel %vm2142_vm5, %v2143_v18, %v2144_v42  ;;  %v432_v53 = vsel %vm332_vm2, %v427_v45, %v431_v8  ;;  %v441_v57 = vshrl.u32 %v6061_v20, 16 }
  0x36   : > { %v449_v61 = vshrl.u32 %v6078_v44, 16  ;;  %v453_v62 = vshll.u32 %v6084_v50, 16  ;;  %v2148_v63 = vrot.slane %v5936_v41, 2  ;;  %v447_v0 = vrot.slane %v445_v23, 1 }
  0x37   : > { %5253 = vmatmul.mubr.msk.bf16.gmra.mrb[12].mxu0 %vm481_vm3, %v1775_v10  ;;  %v440_v59 = vsel %vm332_vm2, %v435_v47, %v439_v48  ;;  %v443_v5 = vor.u32 %v441_v57, %v439_v48  ;;  %v2147_v12 = vsel %vm2142_vm5, %v2144_v42, %v2146_v56  ;;  %v6111_v19 = vand.u32 %v4800_v34, %v5853_v4  ;;  %v6128_v42 = vld [vmem:[%s5881_s28 + $0x90] ss:$0 sps:$4 sm:$0x11]   ;;  %v6155_v34 = vld [vmem:[%s5881_s28 + $0x60] sm:$0xff]  }
  0x38   : > { %5256 = vmatprep.mubr.msk.bf16.mxu0 %vm481_vm3, %v1784_v27  ;;  %v451_v16 = vor.u32 %v449_v61, %v447_v0  ;;  %v455_v10 = vrot.slane %v453_v62, 1  ;;  %v2149_v41 = vsel %vm2142_vm5, %v2146_v56, %v2148_v63  ;;  %v461_v27 = vshll.u32 %v6099_v2, 16 }
  0x39   : > { %v448_v28 = vsel %vm332_vm2, %v443_v5, %v447_v0  ;;  %v2150_v29 = vrot.slane %v5949_v55, 2  ;;  %v469_v37 = vshll.u32 %v6107_v17, 16  ;;  %v2152_v39 = vrot.slane %v5962_v1, 2  ;;  %v4684_v5 = vld [vmem:[%s7186_s1 + $0x6] sm:$0x3] }
  0x3a   : > { %v456_v32 = vsel %vm332_vm2, %v451_v16, %v455_v10  ;;  %v463_v18 = vrot.slane %v461_v27, 1  ;;  %v473_v47 = vshrl.u32 %v6107_v17, 16  ;;  %v477_v48 = vshll.u32 %v6128_v42, 16  ;;  %v6174_v16 = vld [vmem:[%s5881_s28 + $0x68] sm:$0xff]  }
  0x3b   : > { %v471_v45 = vrot.slane %v469_v37, 1 }
  0x3c   : > { %5105 = vmatmul.mubr.msk.bf16.gmra.mrb[16].mxu1 %vm481_vm3, %v416_v31  ;;  %v457_v31 = vshrl.u32 %v6084_v50, 16  ;;  %v479_v57 = vrot.slane %v477_v48, 1 }
  0x3d   : > { %5108 = vmatprep.mubr.msk.bf16.mxu1 %vm481_vm3, %v424_v36  ;;  %v465_v36 = vshrl.u32 %v6099_v2, 16  ;;  %v475_v56 = vor.u32 %v473_v47, %v471_v45  ;;  %v6227_v47 = vld [vmem:[%s5881_s28 + $0x98] ss:$0 sps:$4 sm:$0x33]  }
  0x3e   : > { %v459_v55 = vor.u32 %v457_v31, %v455_v10  ;;  %v6179_v10 = vld [vmem:[%s5881_s28 + $0x70] sm:$0xff]   ;;  %v6195_v31 = vld [vmem:[%s5881_s28 + $0x80] sm:$0xff]  }
  0x3f   : > { %5257 = vmatmul.mubr.msk.bf16.gmra.mrb[16].mxu0 %vm481_vm3, %v1793_v46  ;;  %v467_v8 = vor.u32 %v465_v36, %v463_v18  ;;  %v2153_v46 = vsel %vm2142_vm5, %v2150_v29, %v2152_v39  ;;  %v480_v62 = vsel %vm332_vm2, %v475_v56, %v479_v57  ;;  %v2168_v27 = vrot.slane %v6179_v10, 2 }
  0x40   : > { %5278 = vmatprep.mubr.msk.bf16.mxu0 %vm481_vm3, %v2145_v52  ;;  %v464_v1 = vsel %vm332_vm2, %v459_v55, %v463_v18  ;;  %v2154_v52 = vrot.slane %v5980_v30, 2  ;;  %v2158_v30 = vrot.slane %v6012_v7, 2  ;;  %v2162_v7 = vrot.slane %v6037_v38, 2  ;;  %v6211_v55 = vld [vmem:[%s5881_s28 + $0x90] sm:$0xff]  }
  0x41   : > { %v472_v23 = vsel %vm332_vm2, %v467_v8, %v471_v45  ;;  %v2172_v36 = vrot.slane %v6195_v31, 2  ;;  %v2176_v8 = vrot.slane %v6211_v55, 2  ;;  %v2450_v45 = vld [vmem:[%s5881_s28 + $0x10] sm:$0xc]  ;;  %vm6832_vm2 = vmor %vm3985_vm12, %vm4098_vm0 }
  0x44   : > { %5109 = vmatmul.mubr.msk.bf16.gmra.mrb[20].mxu1 %vm481_vm3, %v432_v53  ;;  %v2156_v53 = vrot.slane %v5999_v51, 2  ;;  %v2160_v51 = vrot.slane %v6024_v21, 2  ;;  %v6164_v21 = vand.u32 %v4684_v5, %v5853_v4 }
  0x45   : > { %5112 = vmatprep.mubr.msk.bf16.mxu1 %vm481_vm3, %v440_v59  ;;  %v2155_v59 = vsel %vm2142_vm5, %v2152_v39, %v2154_v52  ;;  %v6207_v39 = vld [vmem:[%s5881_s28 + $0x88] sm:$0xff]  }
  0x46   : > { %v2157_v61 = vsel %vm2142_vm5, %v2154_v52, %v2156_v53  ;;  %v2161_v0 = vsel %vm2142_vm5, %v2158_v30, %v2160_v51 }
  0x47   : > { %5279 = vmatmul.mubr.msk.bf16.vlgmr.msra.gmra.mrb[0].mxu0 %vm481_vm3, %v2147_v12  ;;  %v2163_v12 = vsel %vm2142_vm5, %v2160_v51, %v2162_v7 }
  0x48   : > { %5315 = vmatpush3.bf16.msra.mxu0 %v5919_v26  ;;  %5282 = vmatprep.mubr.msk.bf16.mxu0 %vm481_vm3, %v2149_v41  ;;  %v2151_v26 = vsel %vm2142_vm5, %v2148_v63, %v2150_v29  ;;  %v2159_v63 = vsel %vm2142_vm5, %v2156_v53, %v2158_v30  ;;  %v2166_v41 = vrot.slane %v6174_v16, 2  ;;  %v2178_v53 = vrot.slane %v6227_v47, 2  ;;  %v6251_v30 = vld [vmem:[%s5881_s28 + $0x28] sm:$0xff]  }
  0x49   : > { %5352 = vmatprep.subr.bf16.mxu0 %v6111_v19 }
  0x4a   : > { %v2169_v29 = vsel %vm2142_vm5, %v2166_v41, %v2168_v27 }
  0x4c   : > { %5113 = vmatmul.mubr.msk.bf16.gmra.mrb[24].mxu1 %vm481_vm3, %v448_v28  ;;  %v6191_v28 = vld [vmem:[%s5881_s28 + $0x78] sm:$0xff]  }
  0x4d   : > { %5116 = vmatprep.mubr.msk.bf16.mxu1 %vm481_vm3, %v456_v32  ;;  %v2170_v32 = vrot.slane %v6191_v28, 2 }
  0x4f   : > { %5283 = vmatmul.mubr.msk.bf16.gmra.mrb[4].mxu0 %vm481_vm3, %v2151_v26  ;;  %v2171_v37 = vsel %vm2142_vm5, %v2168_v27, %v2170_v32  ;;  %v2173_v18 = vsel %vm2142_vm5, %v2170_v32, %v2172_v36  ;;  %v2174_v26 = vrot.slane %v6207_v39, 2  ;;  %v936_v32 = vld [vmem:[%s5881_s28] sm:$0xe] }
  0x50   : > { %5286 = vmatprep.mubr.msk.bf16.mxu0 %vm481_vm3, %v2153_v46  ;;  %v6221_v46 = vld [vmem:[%s5881_s28 + $0x14] sm:$0xf] }
  0x51   : > { %v2177_v48 = vsel %vm2142_vm5, %v2174_v26, %v2176_v8  ;;  %v6231_v52 = vcombine.low %v2450_v45, %v6221_v46 }
  0x53   : > { %v2582_v56 = vrot.slane %v6231_v52, 2 }
  0x54   : > { %5117 = vmatmul.mubr.msk.bf16.gmra.mrb[28].mxu1 %vm481_vm3, %v464_v1  ;;  %v2175_v1 = vsel %vm2142_vm5, %v2172_v36, %v2174_v26 }
  0x55   : > { %5120 = vmatprep.mubr.msk.bf16.mxu1 %vm481_vm3, %v472_v23  ;;  %v6234_v23 = vld [vmem:[%s5881_s28 + $0x18] sm:$0xff]  }
  0x56   : > { %v2583_v57 = vrot.slane %v6234_v23, 2 }
  0x57   : > { %5287 = vmatmul.mubr.msk.bf16.gmra.mrb[8].mxu0 %vm481_vm3, %v2155_v59  ;;  %v2179_v59 = vsel %vm2142_vm5, %v2176_v8, %v2178_v53  ;;  %v6305_v8 = vld [vmem:[%s5881_s28 + $0x50] sm:$0xff]  }
  0x58   : > { %5290 = vmatprep.mubr.msk.bf16.mxu0 %vm481_vm3, %v2157_v61  ;;  %v6247_v61 = vld [vmem:[%s5881_s28 + $0x20] sm:$0xff]   ;;  %v2597_v53 = vrot.slane %v6305_v8, 2 }
  0x59   : > { %v2585_v51 = vrot.slane %v6247_v61, 2 }
  0x5b   : > { %v2586_v5 = vsel %vm2142_vm5, %v2583_v57, %v2585_v51 }
  0x5c   : > { %5121 = vmatmul.mubr.msk.bf16.gmra.mrb[32].mxu1 %vm481_vm3, %v480_v62  ;;  %v2584_v62 = vsel %vm2142_vm5, %v2582_v56, %v2583_v57 }
  0x5d   : > { %5126 = vmatprep.mubr.msk.bf16.mxu1 %vm481_vm3, %v5893_v14  ;;  %v2164_v14 = vrot.slane %v6155_v34, 2 }
  0x5f   : > { %5291 = vmatmul.mubr.msk.bf16.gmra.mrb[12].mxu0 %vm481_vm3, %v2159_v63  ;;  %v2165_v38 = vsel %vm2142_vm5, %v2162_v7, %v2164_v14  ;;  %v2587_v63 = vrot.slane %v6251_v30, 2  ;;  %v6266_v7 = vld [vmem:[%s5881_s28 + $0x30] sm:$0xff]  }
  0x60   : > { %5294 = vmatprep.mubr.msk.bf16.mxu0 %vm481_vm3, %v2161_v0  ;;  %v4820_v0 = vld [vmem:[%s7186_s1 + $0x10] sm:$0x3] }
  0x64   : > { %5127 = vmatmul.mubr.msk.bf16.vlgmr.msra.gmra.mrb[0].mxu1 %vm481_vm3, %v5896_v15 }
  0x65   : > { %5130 = vmatprep.mubr.msk.bf16.mxu1 %vm481_vm3, %v5913_v24  ;;  %5163 = vmatpush3.bf16.msra.mxu1 %v5930_v35  ;;  %v2167_v35 = vsel %vm2142_vm5, %v2164_v14, %v2166_v41  ;;  %v2588_v14 = vsel %vm2142_vm5, %v2585_v51, %v2587_v63  ;;  %v2589_v41 = vrot.slane %v6266_v7, 2  ;;  %v948_v51 = vrot.slane %v5933_v40, 1 }
  0x66   : > { %5200 = vmatprep.subr.bf16.mxu1 %v6164_v21 }
  0x67   : > { %5295 = vmatmul.mubr.msk.bf16.gmra.mrb[16].mxu0 %vm481_vm3, %v2163_v12  ;;  %v6270_v12 = vld [vmem:[%s5881_s28 + $0x38] sm:$0xff]  }
  0x68   : > { %5298 = vmatprep.mubr.msk.bf16.mxu0 %vm481_vm3, %v2165_v38  ;;  %v6273_v38 = vand.u32 %v4820_v0, %v5853_v4  ;;  %v2591_v27 = vrot.slane %v6270_v12, 2  ;;  %v2590_v4 = vsel %vm2142_vm5, %v2587_v63, %v2589_v41  ;;  %v6328_v0 = vld [vmem:[%s5881_s28 + $0x68] sm:$0xff]  }
  0x6c   : > { %5131 = vmatmul.mubr.msk.bf16.gmra.mrb[4].mxu1 %vm481_vm3, %v5933_v40  ;;  %v950_v40 = vrot.slane %v5946_v54, 1 }
  0x6d   : > { %5134 = vmatprep.mubr.msk.bf16.mxu1 %vm481_vm3, %v5946_v54 }
  0x6e   : > { %v951_v54 = vsel %vm942_vm6, %v948_v51, %v950_v40 }
  0x6f   : > { %5299 = vmatmul.mubr.msk.bf16.gmra.mrb[20].mxu0 %vm481_vm3, %v2167_v35  ;;  %v6287_v35 = vld [vmem:[%s5881_s28 + $0x40] sm:$0xff]  }
  0x70   : > { %5302 = vmatprep.mubr.msk.bf16.mxu0 %vm481_vm3, %v2169_v29  ;;  %v6291_v29 = vld [vmem:[%s5881_s28 + $0x48] sm:$0xff]   ;;  %v2593_v36 = vrot.slane %v6287_v35, 2 }
  0x72   : > { %v2594_v26 = vsel %vm2142_vm5, %v2591_v27, %v2593_v36 }
  0x74   : > { %5135 = vmatmul.mubr.msk.bf16.gmra.mrb[8].mxu1 %vm481_vm3, %v5955_v60 }
  0x75   : > { %5138 = vmatprep.mubr.msk.bf16.mxu1 %vm481_vm3, %v5967_v9 }
  0x77   : > { %5303 = vmatmul.mubr.msk.bf16.gmra.mrb[24].mxu0 %vm481_vm3, %v2171_v37  ;;  %v4665_v37 = vcombine.low %v936_v32, %v5888_v13  ;;  %v6310_v13 = vld [vmem:[%s5881_s28 + $0x58] sm:$0xff]  }
  0x78   : > { %5306 = vmatprep.mubr.msk.bf16.mxu0 %vm481_vm3, %v2173_v18  ;;  %v2595_v18 = vrot.slane %v6291_v29, 2  ;;  %v2599_v57 = vrot.slane %v6310_v13, 2 }
  0x79   : > { %v943_v45 = vrot.slane %v4665_v37, 1 }
  0x7a   : > { %v2600_v63 = vsel %vm2142_vm5, %v2597_v53, %v2599_v57 }
  0x7c   : > { %5139 = vmatmul.mubr.msk.bf16.gmra.mrb[12].mxu1 %vm481_vm3, %v5989_v43 }
  0x7d   : > { %5142 = vmatprep.mubr.msk.bf16.mxu1 %vm481_vm3, %v6004_v58 }
  0x7f   : > { %5307 = vmatmul.mubr.msk.bf16.gmra.mrb[28].mxu0 %vm481_vm3, %v2175_v1  ;;  %v944_v1 = vrot.slane %v5896_v15, 1  ;;  %v946_v15 = vrot.slane %v5913_v24, 1 }
  0x80   : > { %5310 = vmatprep.mubr.msk.bf16.mxu0 %vm481_vm3, %v2177_v48  ;;  %v2596_v48 = vsel %vm2142_vm5, %v2593_v36, %v2595_v18  ;;  %v6348_v36 = vld [vmem:[%s5881_s28 + $0x78] sm:$0xff]  }
  0x81   : > { %v945_v56 = vsel %vm942_vm6, %v943_v45, %v944_v1  ;;  %v6361_v45 = vld [vmem:[%s5881_s28 + $0x80] sm:$0xff]  }
  0x84   : > { %5143 = vmatmul.mubr.msk.bf16.gmra.mrb[16].mxu1 %vm481_vm3, %v6015_v11 }
  0x85   : > { %5146 = vmatprep.mubr.msk.bf16.mxu1 %vm481_vm3, %v6032_v33 }
  0x87   : > { %5311 = vmatmul.mubr.msk.bf16.gmra.mrb[32].mxu0 %vm481_vm3, %v2179_v59  ;;  %v2598_v59 = vsel %vm2142_vm5, %v2595_v18, %v2597_v53  ;;  %v954_v18 = vrot.slane %v5967_v9, 1  ;;  %v6366_v53 = vld [vmem:[%s5881_s28 + $0x88] sm:$0xff]   ;;  %v3731_v9 = vld [vmem:[%s7188_s3 + $0x10] sm:$0xff] }
  0x88   : > { %5316 = vmatprep.mubr.msk.bf16.mxu0 %vm481_vm3, %v2584_v62  ;;  %v6323_v62 = vld [vmem:[%s5881_s28 + $0x60] sm:$0xff]  }
  0x89   : > { %v2601_v24 = vrot.slane %v6323_v62, 2 }
  0x8c   : > { %5147 = vmatmul.mubr.msk.bf16.gmra.mrb[20].mxu1 %vm481_vm3, %v6042_v49 }
  0x8d   : > { %5150 = vmatprep.mubr.msk.bf16.mxu1 %vm481_vm3, %v6056_v3 }
  0x8f   : > { %5317 = vmatmul.mubr.msk.bf16.vlgmr.msra.gmra.mrb[0].mxu0 %vm481_vm3, %v2586_v5  ;;  %v947_v5 = vsel %vm942_vm6, %v944_v1, %v946_v15  ;;  %v956_v1 = vrot.slane %v5989_v43, 1  ;;  %v3729_v43 = vld [vmem:[%s7188_s3] sm:$0xff] }
  0x90   : > { %5353 = vmatpush3.bf16.msra.mxu0 %v6111_v19  ;;  %5320 = vmatprep.mubr.msk.bf16.mxu0 %vm481_vm3, %v2588_v14  ;;  %v2592_v19 = vsel %vm2142_vm5, %v2589_v41, %v2591_v27  ;;  %v949_v14 = vsel %vm942_vm6, %v946_v15, %v948_v51  ;;  %v2603_v41 = vrot.slane %v6328_v0, 2  ;;  %v2602_v27 = vsel %vm2142_vm5, %v2599_v57, %v2601_v24 }
  0x91   : > { %5390 = vmatprep.subr.bf16.mxu0 %v6273_v38  ;;  %v2609_v57 = vrot.slane %v6361_v45, 2  ;;  %v957_v15 = vsel %vm942_vm6, %v954_v18, %v956_v1  ;;  %v2611_v51 = vrot.slane %v6366_v53, 2 }
  0x92   : > { %v2604_v32 = vsel %vm2142_vm5, %v2601_v24, %v2603_v41  ;;  %v6399_v24 = vld [vmem:[%s5881_s28 + $0x90] sm:$0xff]  }
  0x94   : > { %5151 = vmatmul.mubr.msk.bf16.gmra.mrb[24].mxu1 %vm481_vm3, %v6061_v20 }
  0x95   : > { %5154 = vmatprep.mubr.msk.bf16.mxu1 %vm481_vm3, %v6078_v44 }
  0x97   : > { %5321 = vmatmul.mubr.msk.bf16.gmra.mrb[4].mxu0 %vm481_vm3, %v2590_v4  ;;  %v6342_v4 = vld [vmem:[%s5881_s28 + $0x70] sm:$0xff]  }
  0x98   : > { %5324 = vmatprep.mubr.msk.bf16.mxu0 %vm481_vm3, %v2592_v19  ;;  %v952_v19 = vrot.slane %v5955_v60, 1  ;;  %v2607_v60 = vrot.slane %v6348_v36, 2 }
  0x9a   : > { %v953_v37 = vsel %vm942_vm6, %v950_v40, %v952_v19  ;;  %v2612_v40 = vsel %vm2142_vm5, %v2609_v57, %v2611_v51 }
  0x9c   : > { %5155 = vmatmul.mubr.msk.bf16.gmra.mrb[28].mxu1 %vm481_vm3, %v6084_v50 }
  0x9d   : > { %5158 = vmatprep.mubr.msk.bf16.mxu1 %vm481_vm3, %v6099_v2 }
  0x9f   : > { %5325 = vmatmul.mubr.msk.bf16.gmra.mrb[8].mxu0 %vm481_vm3, %v2594_v26 }
  0xa0   : > { %5328 = vmatprep.mubr.msk.bf16.mxu0 %vm481_vm3, %v2596_v48 }
  0xa4   : > { %5159 = vmatmul.mubr.msk.bf16.gmra.mrb[32].mxu1 %vm481_vm3, %v6107_v17 }
  0xa5   : > { %5164 = vmatprep.mubr.msk.bf16.mxu1 %vm481_vm3, %v945_v56  ;;  %v955_v56 = vsel %vm942_vm6, %v952_v19, %v954_v18  ;;  %v3732_v19 = vld [vmem:[%s7188_s3 + $0x18] sm:$0xff]  ;;  %v2908_v18 = vshll.u32 %v6234_v23, 16 }
  0xa7   : > { %5329 = vmatmul.mubr.msk.bf16.gmra.mrb[12].mxu0 %vm481_vm3, %v2598_v59  ;;  %v5813_v59 = vmov 0  }
  0xa8   : > { %5332 = vmatprep.mubr.msk.bf16.mxu0 %vm481_vm3, %v2600_v63  ;;  %5730 = vset.pattern.permute.xlu1 %v5813_v59  ;;  %3982 = vst.msk [vmem:[%s6375_s17] sm:$0xf] %vm3981_vm7, %v5813_v59  ;;  %3983 = vst.msk [vmem:[%s6375_s17 + $0x4] sm:$0xf] %vm3981_vm7, %v5813_v59  ;;  %v958_v63 = vrot.slane %v6004_v58, 1  ;;  %v3730_v58 = vld [vmem:[%s7188_s3 + $0x8] sm:$0xff] }
  0xa9   : > { %4543 = vst.msk [vmem:[%s6375_s17 + $0x9c] sm:$0xf] %vm3981_vm7, %v5813_v59  ;;  %5729 = vset.pattern.permute.xlu0 %v5813_v59  ;;  %3777 = vperm.xlu1 %5730, %v3731_v9   ;;  %v5789_v9 = vld [vmem:[%s5881_s28 + $0xa0] ss:$0 sps:$4 sm:$0x33]  }
  0xaa   : > { %4545 = vst.msk [vmem:[%s6375_s17 + $0xa0] sm:$0x7] %vm4544_vm8, %v5813_v59  ;;  %3767 = vperm.xlu0 %5729, %v3729_v43   ;;  %v964_v43 = vrot.slane %v6042_v49, 1  ;;  %v2617_v49 = vrot.slane %v5789_v9, 2 }
  0xac   : > { %5165 = vmatmul.mubr.msk.bf16.vlgmr.msra.gmra.mrb[0].mxu1 %vm481_vm3, %v947_v5  ;;  %v2610_v5 = vsel %vm2142_vm5, %v2607_v60, %v2609_v57 }
  0xad   : > { %5168 = vmatprep.mubr.msk.bf16.mxu1 %vm481_vm3, %v949_v14  ;;  %5201 = vmatpush3.bf16.msra.mxu1 %v6164_v21  ;;  %v2605_v21 = vrot.slane %v6342_v4, 2  ;;  %v960_v14 = vrot.slane %v6015_v11, 1  ;;  %v2613_v11 = vrot.slane %v6399_v24, 2 }
  0xae   : > { %5428 = vmatprep.subr.bf16.mxu1 %v5861_v6  ;;  %3782 = vperm.xlu1 %5730, %v3732_v19   ;;  %v2917_v19 = vshll.u32 %v6247_v61, 16 }
  0xaf   : > { %5333 = vmatmul.mubr.msk.bf16.gmra.mrb[16].mxu0 %vm481_vm3, %v2602_v27  ;;  %v2606_v26 = vsel %vm2142_vm5, %v2603_v41, %v2605_v21  ;;  %v2608_v48 = vsel %vm2142_vm5, %v2605_v21, %v2607_v60  ;;  %v6403_v41 = vld [vmem:[%s5881_s28 + $0x98] sm:$0xff]   ;;  %v959_v27 = vsel %vm942_vm6, %v956_v1, %v958_v63  ;;  %v2897_v21 = vshrl.u32 %v6231_v52, 16  ;;  %3772 = vperm.xlu0 %5729, %v3730_v58   ;;  %v3733_v1 = vld [vmem:[%s7188_s3 + $0x20] sm:$0xff] }
  0xb0   : > { %5336 = vmatprep.mubr.msk.bf16.mxu0 %vm481_vm3, %v2604_v32  ;;  %v961_v32 = vsel %vm942_vm6, %v958_v63, %v960_v14  ;;  %v2905_v60 = vshrl.u32 %v6234_v23, 16  ;;  %v2910_v63 = vrot.slane %v2908_v18, 3 }
  0xb1   : > { %v2899_v57 = vrot.slane %v2897_v21, 2  ;;  %v3738_v21 = vld [vmem:[%s7188_s3 + $0x48] sm:$0xff] }
  0xb2   : > { %v2907_v59 = vrot.slane %v2905_v60, 2  ;;  %v966_v60 = vrot.slane %v6056_v3, 1  ;;  %v3740_v3 = vld [vmem:[%s7188_s3 + $0x58] sm:$0xff] }
  0xb3   : > { %3787 = vperm.xlu0 %5729, %v3733_v1   ;;  %v2919_v1 = vrot.slane %v2917_v19, 3 }
  0xb4   : > { %5169 = vmatmul.mubr.msk.bf16.gmra.mrb[4].mxu1 %vm481_vm3, %v951_v54  ;;  %v2615_v54 = vrot.slane %v6403_v41, 2 }
  0xb5   : > { %5172 = vmatprep.mubr.msk.bf16.mxu1 %vm481_vm3, %v953_v37  ;;  %v2900_v37 = vshll.u32 %v6231_v52, 16  ;;  %v2614_v52 = vsel %vm2142_vm5, %v2611_v51, %v2613_v11  ;;  %v3735_v51 = vld [vmem:[%s7188_s3 + $0x30] sm:$0xff] }
  0xb6   : > { %v2618_v18 = vsel %vm2142_vm5, %v2615_v54, %v2617_v49  ;;  %v3741_v49 = vld [vmem:[%s7188_s3 + $0x60] sm:$0xff] }
  0xb7   : > { %5337 = vmatmul.mubr.msk.bf16.gmra.mrb[20].mxu0 %vm481_vm3, %v2606_v26  ;;  %v3734_v26 = vld [vmem:[%s7188_s3 + $0x28] sm:$0xff]  ;;  %3797 = vperm.xlu0 %5729, %v3735_v51  }
  0xb8   : > { %5340 = vmatprep.mubr.msk.bf16.mxu0 %vm481_vm3, %v2608_v48  ;;  %v962_v48 = vrot.slane %v6032_v33, 1  ;;  %3792 = vperm.xlu1 %5730, %v3734_v26   ;;  %v3736_v33 = vld [vmem:[%s7188_s3 + $0x38] sm:$0xff]  ;;  %v3742_v51 = vld [vmem:[%s7188_s3 + $0x68] sm:$0xff] }
  0xbc   : > { %5173 = vmatmul.mubr.msk.bf16.gmra.mrb[8].mxu1 %vm481_vm3, %v955_v56  ;;  %v2616_v56 = vsel %vm2142_vm5, %v2613_v11, %v2615_v54  ;;  %3802 = vperm.xlu1 %5730, %v3736_v33   ;;  %v2923_v11 = vshrl.u32 %v6251_v30, 16  ;;  %v3739_v54 = vld [vmem:[%s7188_s3 + $0x50] sm:$0xff]  ;;  %v2944_v33 = vshll.u32 %v6270_v12, 16 }
  0xbd   : > { %5176 = vmatprep.mubr.msk.bf16.mxu1 %vm481_vm3, %v957_v15  ;;  %v2902_v15 = vrot.slane %v2900_v37, 3  ;;  %v3737_v37 = vld [vmem:[%s7188_s3 + $0x40] sm:$0xff] }
  0xbe   : > { %3807 = vperm.xlu0 %5729, %v3737_v37   ;;  %v2946_v37 = vrot.slane %v2944_v33, 3 }
  0xbf   : > { %5341 = vmatmul.mubr.msk.bf16.gmra.mrb[24].mxu0 %vm481_vm3, %v2610_v5  ;;  %v963_v5 = vsel %vm942_vm6, %v960_v14, %v962_v48  ;;  %v2903_v58 = vor.u32 %v2902_v15, %v2899_v57  ;;  %v2911_v14 = vor.u32 %v2910_v63, %v2907_v59  ;;  %v967_v57 = vsel %vm942_vm6, %v964_v43, %v966_v60 }
  0xc0   : > { %5344 = vmatprep.mubr.msk.bf16.mxu0 %vm481_vm3, %v2612_v40  ;;  %v965_v40 = vsel %vm942_vm6, %v962_v48, %v964_v43  ;;  %v968_v48 = vrot.slane %v6061_v20, 1  ;;  %3812 = vperm.xlu1 %5730, %v3738_v21   ;;  %v2932_v59 = vshrl.u32 %v6266_v7, 16  ;;  %v2935_v63 = vshll.u32 %v6266_v7, 16 }
  0xc1   : > { %v2941_v43 = vshrl.u32 %v6270_v12, 16 }
  0xc2   : > { %v969_v15 = vsel %vm942_vm6, %v966_v60, %v968_v48  ;;  %3817 = vperm.xlu0 %5729, %v3739_v54   ;;  %v2934_v19 = vrot.slane %v2932_v59, 2 }
  0xc3   : > { %v2943_v21 = vrot.slane %v2941_v43, 2 }
  0xc4   : > { %5177 = vmatmul.mubr.msk.bf16.gmra.mrb[12].mxu1 %vm481_vm3, %v959_v27  ;;  %v2914_v27 = vshrl.u32 %v6247_v61, 16  ;;  %3822 = vperm.xlu1 %5730, %v3740_v3  }
  0xc5   : > { %5180 = vmatprep.mubr.msk.bf16.mxu1 %vm481_vm3, %v961_v32  ;;  %v2926_v32 = vshll.u32 %v6251_v30, 16 }
  0xc6   : > { %v2916_v26 = vrot.slane %v2914_v27, 2  ;;  %3827 = vperm.xlu0 %5729, %v3741_v49  }
  0xc7   : > { %5345 = vmatmul.mubr.msk.bf16.gmra.mrb[28].mxu0 %vm481_vm3, %v2614_v52  ;;  %v2912_v52 = vsel %vm2895_vm9, %v2903_v58, %v2911_v14  ;;  %v2928_v9 = vrot.slane %v2926_v32, 3  ;;  %v2937_v58 = vrot.slane %v2935_v63, 3 }
  0xc8   : > { %5348 = vmatprep.mubr.msk.bf16.mxu0 %vm481_vm3, %v2616_v56  ;;  %v2925_v56 = vrot.slane %v2923_v11, 2  ;;  %v2920_v20 = vor.u32 %v2919_v1, %v2916_v26  ;;  %v972_v11 = vrot.slane %v6084_v50, 1  ;;  %3832 = vperm.xlu1 %5730, %v3742_v51   ;;  %v2950_v26 = vshrl.u32 %v6287_v35, 16 }
  0xc9   : > { %v2938_v50 = vor.u32 %v2937_v58, %v2934_v19  ;;  %v2953_v1 = vshll.u32 %v6287_v35, 16  ;;  %v2968_v51 = vshrl.u32 %v6305_v8, 16  ;;  %v2977_v19 = vshrl.u32 %v6310_v13, 16 }
  0xca   : > { %v2921_v27 = vsel %vm2895_vm9, %v2911_v14, %v2920_v20  ;;  %v3743_v14 = vld [vmem:[%s7188_s3 + $0x70] sm:$0xff]  ;;  %v2952_v54 = vrot.slane %v2950_v26, 2  ;;  %v2980_v58 = vshll.u32 %v6310_v13, 16 }
  0xcb   : > { %3837 = vperm.xlu0 %5729, %v3743_v14   ;;  %v1382_v14 = vrot.slane %v5916_v25, 1 }
  0xcc   : > { %5181 = vmatmul.mubr.msk.bf16.gmra.mrb[16].mxu1 %vm481_vm3, %v963_v5  ;;  %v2929_v5 = vor.u32 %v2928_v9, %v2925_v56  ;;  %v2962_v56 = vshll.u32 %v6291_v29, 16  ;;  %v3744_v9 = vld [vmem:[%s7188_s3 + $0x78] sm:$0xff] }
  0xcd   : > { %5184 = vmatprep.mubr.msk.bf16.mxu1 %vm481_vm3, %v965_v40  ;;  %v970_v40 = vrot.slane %v6078_v44, 1  ;;  %v3764_v44 = vld [vmem:[%s7188_s3 + $0x118] sm:$0xff] }
  0xce   : > { %v2930_v32 = vsel %vm2895_vm9, %v2920_v20, %v2929_v5  ;;  %3942 = vperm.xlu1 %5730, %v3764_v44   ;;  %v2939_v3 = vsel %vm2895_vm9, %v2929_v5, %v2938_v50  ;;  %v2955_v20 = vrot.slane %v2953_v1, 3  ;;  %v2964_v43 = vrot.slane %v2962_v56, 3  ;;  %v3751_v56 = vld [vmem:[%s7188_s3 + $0xb0] sm:$0xff] }
  0xcf   : > { %5349 = vmatmul.mubr.msk.bf16.gmra.mrb[32].mxu0 %vm481_vm3, %v2618_v18  ;;  %v971_v60 = vsel %vm942_vm6, %v968_v48, %v970_v40  ;;  %v973_v18 = vsel %vm942_vm6, %v970_v40, %v972_v11  ;;  %v2947_v48 = vor.u32 %v2946_v37, %v2943_v21  ;;  %3842 = vperm.xlu0 %5729, %v3744_v9   ;;  %v2971_v40 = vshll.u32 %v6305_v8, 16 }
  0xd0   : > { %5354 = vmatprep.mubr.msk.bf16.mxu0 %vm481_vm3, %v2912_v52  ;;  %v2959_v52 = vshrl.u32 %v6291_v29, 16  ;;  %v2956_v5 = vor.u32 %v2955_v20, %v2952_v54  ;;  %v978_v21 = vrot.slane %v6128_v42, 1  ;;  %v2970_v37 = vrot.slane %v2968_v51, 2  ;;  %v3750_v42 = vld [vmem:[%s7188_s3 + $0xa8] sm:$0xff] }
  0xd1   : > { %v2948_v59 = vsel %vm2895_vm9, %v2938_v50, %v2947_v48  ;;  %v2973_v44 = vrot.slane %v2971_v40, 3  ;;  %v5793_v50 = vld [vmem:[%s5881_s28 + $0x10] sm:$0xff]   ;;  %v2979_v1 = vrot.slane %v2977_v19, 2  ;;  %v2986_v9 = vshrl.u32 %v6323_v62, 16 }
  0xd2   : > { %v2961_v63 = vrot.slane %v2959_v52, 2  ;;  %v2982_v52 = vrot.slane %v2980_v58, 3  ;;  %v2995_v54 = vshrl.u32 %v6328_v0, 16  ;;  %v2998_v20 = vshll.u32 %v6328_v0, 16  ;;  %v3755_v58 = vld [vmem:[%s7188_s3 + $0xd0] sm:$0xff] }
  0xd3   : > { %v2988_v51 = vrot.slane %v2986_v9, 2 }
  0xd4   : > { %5185 = vmatmul.mubr.msk.bf16.gmra.mrb[20].mxu1 %vm481_vm3, %v967_v57  ;;  %v974_v57 = vrot.slane %v6099_v2, 1  ;;  %v3747_v2 = vld [vmem:[%s7188_s3 + $0x90] sm:$0xff]  ;;  %v2997_v40 = vrot.slane %v2995_v54, 2  ;;  %v3000_v19 = vrot.slane %v2998_v20, 3 }
  0xd5   : > { %5188 = vmatprep.mubr.msk.bf16.mxu1 %vm481_vm3, %v969_v15  ;;  %v976_v15 = vrot.slane %v6107_v17, 1  ;;  %v3746_v17 = vld [vmem:[%s7188_s3 + $0x88] sm:$0xff]  ;;  %v3759_v20 = vld [vmem:[%s7188_s3 + $0xf0] sm:$0xff] }
  0xd6   : > { %v975_v33 = vsel %vm942_vm6, %v972_v11, %v974_v57  ;;  %3852 = vperm.xlu0 %5729, %v3746_v17   ;;  %v3749_v11 = vld [vmem:[%s7188_s3 + $0xa0] sm:$0xff] }
  0xd7   : > { %5355 = vmatmul.mubr.msk.bf16.vlgmr.msra.gmra.mrb[0].mxu0 %vm481_vm3, %v2921_v27  ;;  %v977_v49 = vsel %vm942_vm6, %v974_v57, %v976_v15  ;;  %v2965_v27 = vor.u32 %v2964_v43, %v2961_v63  ;;  %v979_v25 = vsel %vm942_vm6, %v976_v15, %v978_v21  ;;  %v2989_v57 = vshll.u32 %v6323_v62, 16  ;;  %v3753_v15 = vld [vmem:[%s7188_s3 + $0xc0] sm:$0xff]  ;;  %v5794_v63 = vld [vmem:[%s5881_s28 + $0x18] sm:$0xff]  }
  0xd8   : > { %5391 = vmatpush3.bf16.msra.mxu0 %v6273_v38  ;;  %5358 = vmatprep.mubr.msk.bf16.mxu0 %vm481_vm3, %v2930_v32  ;;  %v3745_v38 = vld [vmem:[%s7188_s3 + $0x80] sm:$0xff]  ;;  %v3748_v32 = vld [vmem:[%s7188_s3 + $0x98] sm:$0xff]  ;;  %v1385_v43 = vrot.slane %v5794_v63, 1  ;;  %v3022_v63 = vshrl.u32 %v6361_v45, 16 }
  0xd9   : > { %3847 = vperm.xlu1 %5730, %v3745_v38   ;;  %v2966_v26 = vsel %vm2895_vm9, %v2956_v5, %v2965_v27  ;;  %v5795_v17 = vld [vmem:[%s5881_s28 + $0x20] sm:$0xff]  }
  0xda   : > { %3862 = vperm.xlu0 %5729, %v3748_v32  }
  0xdc   : > { %5189 = vmatmul.mubr.msk.bf16.gmra.mrb[24].mxu1 %vm481_vm3, %v971_v60  ;;  %v2957_v60 = vsel %vm2895_vm9, %v2947_v48, %v2956_v5  ;;  %v2974_v48 = vor.u32 %v2973_v44, %v2970_v37  ;;  %v1387_v5 = vrot.slane %v5795_v17, 1  ;;  %v3004_v37 = vshrl.u32 %v6342_v4, 16  ;;  %v3761_v17 = vld [vmem:[%s7188_s3 + $0x100] sm:$0xff] }
  0xdd   : > { %5192 = vmatprep.mubr.msk.bf16.mxu1 %vm481_vm3, %v973_v18  ;;  %3857 = vperm.xlu1 %5730, %v3747_v2   ;;  %v1383_v18 = vrot.slane %v5793_v50, 1  ;;  %v2991_v2 = vrot.slane %v2989_v57, 3  ;;  %v3001_v44 = vor.u32 %v3000_v19, %v2997_v40  ;;  %v3016_v50 = vshll.u32 %v6348_v36, 16 }
  0xde   : > { %3872 = vperm.xlu0 %5729, %v3750_v42   ;;  %v1388_v21 = vsel %vm942_vm6, %v1385_v43, %v1387_v5  ;;  %v3006_v42 = vrot.slane %v3004_v37, 2 }
  0xdf   : > { %5359 = vmatmul.mubr.msk.bf16.gmra.mrb[4].mxu0 %vm481_vm3, %v2939_v3  ;;  %v1384_v38 = vsel %vm942_vm6, %v1382_v14, %v1383_v18  ;;  %v2983_v3 = vor.u32 %v2982_v52, %v2979_v1  ;;  %v2992_v32 = vor.u32 %v2991_v2, %v2988_v51  ;;  %v3013_v14 = vshrl.u32 %v6348_v36, 16  ;;  %v5796_v1 = vld [vmem:[%s5881_s28 + $0x28] sm:$0xff]  }
  0xe0   : > { %5362 = vmatprep.mubr.msk.bf16.mxu0 %vm481_vm3, %v2948_v59  ;;  %v3752_v59 = vld [vmem:[%s7188_s3 + $0xb8] sm:$0xff]  ;;  %v1389_v52 = vrot.slane %v5796_v1, 1  ;;  %v3018_v54 = vrot.slane %v3016_v50, 3  ;;  %v3031_v51 = vshrl.u32 %v6366_v53, 16  ;;  %v3034_v2 = vshll.u32 %v6366_v53, 16  ;;  %v3762_v50 = vld [vmem:[%s7188_s3 + $0x108] sm:$0xff] }
  0xe1   : > { %3867 = vperm.xlu1 %5730, %v3749_v11   ;;  %v3754_v11 = vld [vmem:[%s7188_s3 + $0xc8] sm:$0xff]  ;;  %v3002_v9 = vsel %vm2895_vm9, %v2992_v32, %v3001_v44  ;;  %v3015_v57 = vrot.slane %v3013_v14, 2  ;;  %v3763_v14 = vld [vmem:[%s7188_s3 + $0x110] sm:$0xff]  ;;  %v3040_v1 = vshrl.u32 %v6399_v24, 16 }
  0xe2   : > { %3882 = vperm.xlu0 %5729, %v3752_v59   ;;  %v3033_v37 = vrot.slane %v3031_v51, 2 }
  0xe4   : > { %5193 = vmatmul.mubr.msk.bf16.gmra.mrb[28].mxu1 %vm481_vm3, %v975_v33  ;;  %v2975_v33 = vsel %vm2895_vm9, %v2965_v27, %v2974_v48  ;;  %v1386_v27 = vsel %vm942_vm6, %v1383_v18, %v1385_v43  ;;  %v3757_v18 = vld [vmem:[%s7188_s3 + $0xe0] sm:$0xff]  ;;  %v3025_v43 = vshll.u32 %v6361_v45, 16 }
  0xe5   : > { %5196 = vmatprep.mubr.msk.bf16.mxu1 %vm481_vm3, %v977_v49  ;;  %3877 = vperm.xlu1 %5730, %v3751_v56   ;;  %v2984_v49 = vsel %vm2895_vm9, %v2974_v48, %v2983_v3  ;;  %v2993_v56 = vsel %vm2895_vm9, %v2983_v3, %v2992_v32  ;;  %v5797_v48 = vld [vmem:[%s5881_s28 + $0x30] sm:$0xff]   ;;  %v1390_v3 = vsel %vm942_vm6, %v1387_v5, %v1389_v52  ;;  %v3760_v5 = vld [vmem:[%s7188_s3 + $0xf8] sm:$0xff] }
  0xe6   : > { %3892 = vperm.xlu0 %5729, %v3754_v11   ;;  %v3027_v11 = vrot.slane %v3025_v43, 3 }
  0xe7   : > { %5363 = vmatmul.mubr.msk.bf16.gmra.mrb[8].mxu0 %vm481_vm3, %v2957_v60  ;;  %v3007_v60 = vshll.u32 %v6342_v4, 16 }
  0xe8   : > { %5366 = vmatprep.mubr.msk.bf16.mxu0 %vm481_vm3, %v2966_v26  ;;  %v3756_v26 = vld [vmem:[%s7188_s3 + $0xd8] sm:$0xff] }
  0xe9   : > { %3887 = vperm.xlu1 %5730, %v3753_v15  }
  0xea   : > { %3902 = vperm.xlu0 %5729, %v3756_v26  }
  0xec   : > { %5197 = vmatmul.mubr.msk.bf16.gmra.mrb[32].mxu1 %vm481_vm3, %v979_v25  ;;  %v3009_v25 = vrot.slane %v3007_v60, 3  ;;  %v3036_v60 = vrot.slane %v3034_v2, 3 }
  0xed   : > { %5202 = vmatprep.mubr.msk.bf16.mxu1 %vm481_vm3, %v1384_v38  ;;  %3897 = vperm.xlu1 %5730, %v3755_v58   ;;  %v1391_v38 = vrot.slane %v5797_v48, 1  ;;  %v3024_v58 = vrot.slane %v3022_v63, 2  ;;  %v5800_v48 = vld [vmem:[%s5881_s28 + $0x48] sm:$0xff]  }
  0xee   : > { %v3010_v15 = vor.u32 %v3009_v25, %v3006_v42  ;;  %v3049_v42 = vshrl.u32 %v6403_v41, 16  ;;  %v3052_v25 = vshll.u32 %v6403_v41, 16 }
  0xef   : > { %5367 = vmatmul.mubr.msk.bf16.gmra.mrb[12].mxu0 %vm481_vm3, %v2975_v33  ;;  %v1392_v59 = vsel %vm942_vm6, %v1389_v52, %v1391_v38  ;;  %v3019_v33 = vor.u32 %v3018_v54, %v3015_v57  ;;  %v3043_v52 = vshll.u32 %v6399_v24, 16  ;;  %v3042_v57 = vrot.slane %v3040_v1, 2 }
  0xf0   : > { %5370 = vmatprep.mubr.msk.bf16.mxu0 %vm481_vm3, %v2984_v49  ;;  %v5798_v49 = vld [vmem:[%s5881_s28 + $0x38] sm:$0xff]   ;;  %v3011_v19 = vsel %vm2895_vm9, %v3001_v44, %v3010_v15  ;;  %v3054_v63 = vrot.slane %v3052_v25, 3  ;;  %v1407_v1 = vrot.slane %v6179_v10, 1  ;;  %v3348_v25 = vrot.slane %v6251_v30, 3 }
  0xf1   : > { %3907 = vperm.xlu1 %5730, %v3757_v18   ;;  %v1393_v40 = vrot.slane %v5798_v49, 1  ;;  %v3028_v18 = vor.u32 %v3027_v11, %v3024_v58  ;;  %v3045_v54 = vrot.slane %v3043_v52, 3  ;;  %v3336_v49 = vld [vmem:[%s5881_s28 + $0x10] sm:$0x8]  ;;  %v3350_v30 = vrot.slane %v6266_v7, 3 }
  0xf3   : > { %v1394_v44 = vsel %vm942_vm6, %v1391_v38, %v1393_v40  ;;  %v1397_v38 = vrot.slane %v5800_v48, 1  ;;  %v3046_v51 = vor.u32 %v3045_v54, %v3042_v57  ;;  %v1409_v48 = vrot.slane %v6191_v28, 1 }
  0xf4   : > { %5203 = vmatmul.mubr.msk.bf16.vlgmr.msra.gmra.mrb[0].mxu1 %vm481_vm3, %v1386_v27  ;;  %v5799_v27 = vld [vmem:[%s5881_s28 + $0x40] sm:$0xff]  }
  0xf5   : > { %5206 = vmatprep.mubr.msk.bf16.mxu1 %vm481_vm3, %v1388_v21  ;;  %5429 = vmatpush3.bf16.msra.mxu1 %v5861_v6  ;;  %v3758_v6 = vld [vmem:[%s7188_s3 + $0xe8] sm:$0xff]  ;;  %v1395_v32 = vrot.slane %v5799_v27, 1  ;;  %v3020_v21 = vsel %vm2895_vm9, %v3010_v15, %v3019_v33 }
  0xf6   : > { %3917 = vperm.xlu1 %5730, %v3759_v20   ;;  %3912 = vperm.xlu0 %5729, %v3758_v6   ;;  %v5801_v20 = vld [vmem:[%s5881_s28 + $0x50] sm:$0xff]  }
  0xf7   : > { %5371 = vmatmul.mubr.msk.bf16.gmra.mrb[16].mxu0 %vm481_vm3, %v2993_v56  ;;  %v1396_v26 = vsel %vm942_vm6, %v1393_v40, %v1395_v32  ;;  %v3037_v56 = vor.u32 %v3036_v60, %v3033_v37  ;;  %v1399_v6 = vrot.slane %v5801_v20, 1  ;;  %v1398_v43 = vsel %vm942_vm6, %v1395_v32, %v1397_v38  ;;  %v5802_v40 = vld [vmem:[%s5881_s28 + $0x58] sm:$0xff]  }
  0xf8   : > { %5374 = vmatprep.mubr.msk.bf16.mxu0 %vm481_vm3, %v3002_v9  ;;  %v3029_v9 = vsel %vm2895_vm9, %v3019_v33, %v3028_v18  ;;  %v1403_v32 = vrot.slane %v6155_v34, 1  ;;  %v4821_v37 = vcombine.low %v3336_v49, %v6221_v46  ;;  %v3352_v20 = vrot.slane %v6270_v12, 3 }
  0xf9   : > { %v3038_v15 = vsel %vm2895_vm9, %v3028_v18, %v3037_v56  ;;  %v1400_v33 = vsel %vm942_vm6, %v1397_v38, %v1399_v6  ;;  %v3047_v58 = vsel %vm2895_vm9, %v3037_v56, %v3046_v51  ;;  %v3344_v18 = vrot.slane %v6234_v23, 3 }
  0xfa   : > { %3927 = vperm.xlu1 %5730, %v3761_v17   ;;  %3922 = vperm.xlu0 %5729, %v3760_v5   ;;  %v3346_v23 = vrot.slane %v6247_v61, 3  ;;  %v1410_v61 = vsel %vm942_vm6, %v1407_v1, %v1409_v48  ;;  %v3353_v7 = vsel %vm3342_vm10, %v3350_v30, %v3352_v20  ;;  %v3356_v49 = vrot.slane %v6291_v29, 3 }
  0xfc   : > { %5207 = vmatmul.mubr.msk.bf16.gmra.mrb[4].mxu1 %vm481_vm3, %v1390_v3  ;;  %v6640_v3 = vld [vmem:[%s5881_s28 + $0xa0] ss:$0 sps:$4 sm:$0x77]   ;;  %v3347_v38 = vsel %vm3342_vm10, %v3344_v18, %v3346_v23  ;;  %v3349_v57 = vsel %vm3342_vm10, %v3346_v23, %v3348_v25 }
  0xfd   : > { %5210 = vmatprep.mubr.msk.bf16.mxu1 %vm481_vm3, %v1392_v59  ;;  %v3051_v59 = vrot.slane %v3049_v42, 2  ;;  %v3058_v2 = vshrl.u32 %v6640_v3, 16  ;;  %v3061_v17 = vshll.u32 %v6640_v3, 16 }
  0xfe   : > { %3937 = vperm.xlu1 %5730, %v3763_v14   ;;  %3932 = vperm.xlu0 %5729, %v3762_v50  }
  0xff   : > { %5375 = vmatmul.mubr.msk.bf16.gmra.mrb[20].mxu0 %vm481_vm3, %v3011_v19  ;;  %v3055_v5 = vor.u32 %v3054_v63, %v3051_v59  ;;  %v1401_v19 = vrot.slane %v5802_v40, 1  ;;  %v3060_v11 = vrot.slane %v3058_v2, 2  ;;  %v3063_v27 = vrot.slane %v3061_v17, 3 }
 0x100   : > { %5378 = vmatprep.mubr.msk.bf16.mxu0 %vm481_vm3, %v3020_v21  ;;  %v1415_v59 = vrot.slane %v6211_v55, 1  ;;  %v1795_v63 = vshrl.u32 %v6155_v34, 16  ;;  %v1804_v40 = vshrl.u32 %v6174_v16, 16 }
 0x101   : > { %v3056_v21 = vsel %vm2895_vm9, %v3046_v51, %v3055_v5  ;;  %v1402_v60 = vsel %vm942_vm6, %v1399_v6, %v1401_v19  ;;  %v3064_v14 = vor.u32 %v3063_v27, %v3060_v11  ;;  %v1404_v50 = vsel %vm942_vm6, %v1401_v19, %v1403_v32  ;;  %v5792_v51 = vld [vmem:[%s5881_s28 + $0x98] ss:$0 sps:$4 sm:$0x11]  }
 0x102   : > { %v1413_v6 = vrot.slane %v6207_v39, 1  ;;  %v1797_v17 = vrot.slane %v1795_v63, 1  ;;  %v1807_v19 = vshll.u32 %v6174_v16, 16  ;;  %v1816_v27 = vshll.u32 %v6179_v10, 16 }
 0x103   : > { %v3065_v46 = vsel %vm2895_vm9, %v3055_v5, %v3064_v14 }
 0x104   : > { %5211 = vmatmul.mubr.msk.bf16.gmra.mrb[8].mxu1 %vm481_vm3, %v1394_v44  ;;  %v3343_v44 = vrot.slane %v4821_v37, 3  ;;  %v1416_v2 = vsel %vm942_vm6, %v1413_v6, %v1415_v59  ;;  %v1809_v37 = vrot.slane %v1807_v19, 2 }
 0x105   : > { %5214 = vmatprep.mubr.msk.bf16.mxu1 %vm481_vm3, %v1396_v26  ;;  %v1405_v26 = vrot.slane %v6174_v16, 1 }
 0x106   : > { %v3345_v52 = vsel %vm3342_vm10, %v3343_v44, %v3344_v18  ;;  %v3360_v44 = vrot.slane %v6310_v13, 3  ;;  %v1822_v18 = vshrl.u32 %v6191_v28, 16 }
 0x107   : > { %5379 = vmatmul.mubr.msk.bf16.gmra.mrb[24].mxu0 %vm481_vm3, %v3029_v9  ;;  %v1406_v56 = vsel %vm942_vm6, %v1403_v32, %v1405_v26  ;;  %v1408_v42 = vsel %vm942_vm6, %v1405_v26, %v1407_v1  ;;  %v1411_v9 = vrot.slane %v6195_v31, 1  ;;  %v1825_v26 = vshll.u32 %v6191_v28, 16 }
 0x108   : > { %5382 = vmatprep.mubr.msk.bf16.mxu0 %vm481_vm3, %v3038_v15  ;;  %v3351_v15 = vsel %vm3342_vm10, %v3348_v25, %v3350_v30 }
 0x109   : > { %v1412_v54 = vsel %vm942_vm6, %v1409_v48, %v1411_v9  ;;  %v1414_v12 = vsel %vm942_vm6, %v1411_v9, %v1413_v6  ;;  %v1827_v23 = vrot.slane %v1825_v26, 2  ;;  %v1840_v9 = vshrl.u32 %v6207_v39, 16 }
 0x10b   : > { %v1842_v6 = vrot.slane %v1840_v9, 1  ;;  %v6813_v9 = vld [vmem:[%s7187_s2] ss:$0 sm:$0xff] }
 0x10c   : > { %5215 = vmatmul.mubr.msk.bf16.gmra.mrb[12].mxu1 %vm481_vm3, %v1398_v43  ;;  %v1798_v43 = vshll.u32 %v6155_v34, 16  ;;  %v1417_v34 = vrot.slane %v5792_v51, 1  ;;  %v1861_v51 = vshll.u32 %v6227_v47, 16 }
 0x10d   : > { %5218 = vmatprep.mubr.msk.bf16.mxu1 %vm481_vm3, %v1400_v33  ;;  %v3354_v33 = vrot.slane %v6287_v35, 3  ;;  %v1813_v35 = vshrl.u32 %v6179_v10, 16 }
 0x10e   : > { %v1800_v5 = vrot.slane %v1798_v43, 2  ;;  %v1418_v29 = vsel %vm942_vm6, %v1415_v59, %v1417_v34  ;;  %v3366_v59 = vrot.slane %v6342_v4, 3 }
 0x10f   : > { %5383 = vmatmul.mubr.msk.bf16.gmra.mrb[28].mxu0 %vm481_vm3, %v3047_v58  ;;  %v3355_v58 = vsel %vm3342_vm10, %v3352_v20, %v3354_v33  ;;  %v3357_v32 = vsel %vm3342_vm10, %v3354_v33, %v3356_v49  ;;  %v1815_v14 = vrot.slane %v1813_v35, 1 }
 0x110   : > { %5386 = vmatprep.mubr.msk.bf16.mxu0 %vm481_vm3, %v3056_v21  ;;  %v1801_v11 = vor.u32 %v1800_v5, %v1797_v17  ;;  %v1806_v21 = vrot.slane %v1804_v40, 1  ;;  %v3372_v40 = vrot.slane %v6366_v53, 3  ;;  %v3376_v53 = vrot.slane %v6403_v41, 3  ;;  %v3987_v41 = vld [vmem:[%s6375_s17 + $0x8] sm:$0x3] }
 0x112   : > { %v1802_v16 = vsel %vm1695_vm4, %v6070_v22, %v1801_v11  ;;  %v1810_v10 = vor.u32 %v1809_v37, %v1806_v21  ;;  %v1834_v22 = vshll.u32 %v6195_v31, 16  ;;  %v3988_v21 = vsel %vm6774_vm13, 0, %v3987_v41 }
 0x113   : > { %3989 = vst [vmem:[%s6375_s17 + $0x8] sm:$0x3] %v3988_v21 }
 0x114   : > { %5219 = vmatmul.mubr.msk.bf16.gmra.mrb[16].mxu1 %vm481_vm3, %v1402_v60  ;;  %v3358_v60 = vrot.slane %v6305_v8, 3  ;;  %v1831_v8 = vshrl.u32 %v6195_v31, 16  ;;  %v1811_v13 = vsel %vm1695_vm4, %v1801_v11, %v1810_v10  ;;  %v1836_v48 = vrot.slane %v1834_v22, 2 }
 0x115   : > { %5222 = vmatprep.mubr.msk.bf16.mxu1 %vm481_vm3, %v1404_v50  ;;  %v1818_v50 = vrot.slane %v1816_v27, 2 }
 0x116   : > { %v1833_v25 = vrot.slane %v1831_v8, 1 }
 0x117   : > { %5387 = vmatmul.mubr.msk.bf16.gmra.mrb[32].mxu0 %vm481_vm3, %v3065_v46  ;;  %v3359_v46 = vsel %vm3342_vm10, %v3356_v49, %v3358_v60  ;;  %v1819_v1 = vor.u32 %v1818_v50, %v1815_v14  ;;  %v3370_v49 = vrot.slane %v6361_v45, 3  ;;  %v3374_v45 = vrot.slane %v6399_v24, 3 }
 0x118   : > { %5392 = vmatprep.mubr.msk.bf16.mxu0 %vm481_vm3, %v3345_v52  ;;  %v3361_v52 = vsel %vm3342_vm10, %v3358_v60, %v3360_v44  ;;  %v1837_v30 = vor.u32 %v1836_v48, %v1833_v25 }
 0x119   : > { %v1820_v28 = vsel %vm1695_vm4, %v1810_v10, %v1819_v1  ;;  %v3375_v35 = vsel %vm3342_vm10, %v3372_v40, %v3374_v45  ;;  %v3377_v27 = vsel %vm3342_vm10, %v3374_v45, %v3376_v53 }
 0x11c   : > { %5223 = vmatmul.mubr.msk.bf16.gmra.mrb[20].mxu1 %vm481_vm3, %v1406_v56  ;;  %v1824_v56 = vrot.slane %v1822_v18, 1 }
 0x11d   : > { %5226 = vmatprep.mubr.msk.bf16.mxu1 %vm481_vm3, %v1408_v42  ;;  %v3362_v42 = vrot.slane %v6323_v62, 3  ;;  %v1849_v62 = vshrl.u32 %v6211_v55, 16 }
 0x11e   : > { %v1828_v31 = vor.u32 %v1827_v23, %v1824_v56 }
 0x11f   : > { %5393 = vmatmul.mubr.msk.bf16.vlgmr.msra.gmra.mrb[0].mxu0 %vm481_vm3, %v3347_v38  ;;  %v3364_v38 = vrot.slane %v6328_v0, 3  ;;  %v1851_v63 = vrot.slane %v1849_v62, 1 }
 0x120   : > { %5396 = vmatprep.mubr.msk.bf16.mxu0 %vm481_vm3, %v3349_v57  ;;  %v1843_v57 = vshll.u32 %v6207_v39, 16  ;;  %v1829_v0 = vsel %vm1695_vm4, %v1819_v1, %v1828_v31  ;;  %v1838_v39 = vsel %vm1695_vm4, %v1828_v31, %v1837_v30 }
 0x121   : > { %v3365_v20 = vsel %vm3342_vm10, %v3362_v42, %v3364_v38  ;;  %v3367_v33 = vsel %vm3342_vm10, %v3364_v38, %v3366_v59 }
 0x124   : > { %5227 = vmatmul.mubr.msk.bf16.gmra.mrb[24].mxu1 %vm481_vm3, %v1410_v61  ;;  %v3363_v61 = vsel %vm3342_vm10, %v3360_v44, %v3362_v42 }
 0x125   : > { %5230 = vmatprep.mubr.msk.bf16.mxu1 %vm481_vm3, %v1412_v54  ;;  %v1852_v54 = vshll.u32 %v6211_v55, 16 }
 0x127   : > { %5397 = vmatmul.mubr.msk.bf16.gmra.mrb[4].mxu0 %vm481_vm3, %v3351_v15  ;;  %v1845_v15 = vrot.slane %v1843_v57, 2  ;;  %v1854_v43 = vrot.slane %v1852_v54, 2 }
 0x128   : > { %5400 = vmatprep.mubr.msk.bf16.mxu0 %vm481_vm3, %v3353_v7  ;;  %v3368_v7 = vrot.slane %v6348_v36, 3  ;;  %v1863_v36 = vrot.slane %v1861_v51, 2  ;;  %v3778_v48 = vpop.permute.xlu1 %3777 }
 0x129   : > { %v1846_v55 = vor.u32 %v1845_v15, %v1842_v6  ;;  %v3768_v25 = vpop.permute.xlu0 %3767 }
 0x12a   : > { %v3369_v4 = vsel %vm3342_vm10, %v3366_v59, %v3368_v7  ;;  %v3371_v19 = vsel %vm3342_vm10, %v3368_v7, %v3370_v49 }
 0x12b   : > { %v1847_v17 = vsel %vm1695_vm4, %v1837_v30, %v1846_v55 }
 0x12c   : > { %5231 = vmatmul.mubr.msk.bf16.gmra.mrb[28].mxu1 %vm481_vm3, %v1414_v12  ;;  %v1858_v12 = vshrl.u32 %v6227_v47, 16 }
 0x12d   : > { %5234 = vmatprep.mubr.msk.bf16.mxu1 %vm481_vm3, %v1416_v2  ;;  %v1855_v2 = vor.u32 %v1854_v43, %v1851_v63  ;;  %v3783_v30 = vpop.permute.xlu1 %3782 }
 0x12e   : > { %v1860_v5 = vrot.slane %v1858_v12, 1  ;;  %v3773_v38 = vpop.permute.xlu0 %3772 }
 0x12f   : > { %5401 = vmatmul.mubr.msk.bf16.gmra.mrb[8].mxu0 %vm481_vm3, %v3355_v58  ;;  %v1856_v34 = vsel %vm1695_vm4, %v1846_v55, %v1855_v2  ;;  %v3373_v58 = vsel %vm3342_vm10, %v3370_v49, %v3372_v40 }
 0x130   : > { %5404 = vmatprep.mubr.msk.bf16.mxu0 %vm481_vm3, %v3357_v32  ;;  %v1864_v47 = vor.u32 %v1863_v36, %v1860_v5  ;;  %v3378_v32 = vrot.slane %v6640_v3, 3 }
 0x132   : > { %v1865_v11 = vsel %vm1695_vm4, %v1855_v2, %v1864_v47  ;;  %v3788_v43 = vpop.permute.xlu0 %3787 }
 0x134   : > { %5235 = vmatmul.mubr.msk.bf16.gmra.mrb[32].mxu1 %vm481_vm3, %v1418_v29  ;;  %v3379_v29 = vsel %vm3342_vm10, %v3376_v53, %v3378_v32 }
 0x135   : > { %5260 = vmatprep.mubr.msk.bf16.mxu1 %vm481_vm3, %v1802_v16 }
 0x136   : > { %v3798_v32 = vpop.permute.xlu0 %3797 }
 0x137   : > { %5405 = vmatmul.mubr.msk.bf16.gmra.mrb[12].mxu0 %vm481_vm3, %v3359_v46 }
 0x138   : > { %5408 = vmatprep.mubr.msk.bf16.mxu0 %vm481_vm3, %v3361_v52 }
 0x13c   : > { %5261 = vmatmul.mubr.msk.bf16.vlgmr.msra.gmra.mrb[20].mxu1 %vm481_vm3, %v1811_v13 }
 0x13d   : > { %5264 = vmatprep.mubr.msk.bf16.mxu1 %vm481_vm3, %v1820_v28 }
 0x13f   : > { %5409 = vmatmul.mubr.msk.bf16.gmra.mrb[16].mxu0 %vm481_vm3, %v3363_v61 }
 0x140   : > { %5412 = vmatprep.mubr.msk.bf16.mxu0 %vm481_vm3, %v3365_v20 }
 0x144   : > { %5265 = vmatmul.mubr.msk.bf16.gmra.mrb[24].mxu1 %vm481_vm3, %v1829_v0 }
 0x145   : > { %5268 = vmatprep.mubr.msk.bf16.mxu1 %vm481_vm3, %v1838_v39 }
 0x147   : > { %5413 = vmatmul.mubr.msk.bf16.gmra.mrb[20].mxu0 %vm481_vm3, %v3367_v33  ;;  %v6819_v33 = vpop.permute.xlu1 %3792 }
 0x148   : > { %5416 = vmatprep.mubr.msk.bf16.mxu0 %vm481_vm3, %v3369_v4 }
 0x14c   : > { %5269 = vmatmul.mubr.msk.bf16.gmra.mrb[28].mxu1 %vm481_vm3, %v1847_v17 }
 0x14d   : > { %5272 = vmatprep.mubr.msk.bf16.mxu1 %vm481_vm3, %v1856_v34 }
 0x14f   : > { %5417 = vmatmul.mubr.msk.bf16.gmra.mrb[24].mxu0 %vm481_vm3, %v3371_v19 }
 0x150   : > { %5420 = vmatprep.mubr.msk.bf16.mxu0 %vm481_vm3, %v3373_v58 }
 0x154   : > { %5273 = vmatmul.mubr.msk.bf16.gmra.mrb[32].mxu1 %vm481_vm3, %v1865_v11 }
 0x157   : > { %5421 = vmatmul.mubr.msk.bf16.gmra.mrb[28].mxu0 %vm481_vm3, %v3375_v35 }
 0x158   : > { %5424 = vmatprep.mubr.msk.bf16.mxu0 %vm481_vm3, %v3377_v27 }
 0x15f   : > { %5425 = vmatmul.mubr.msk.bf16.gmra.mrb[32].mxu0 %vm481_vm3, %v3379_v29 }
 0x1c7   : > { %v5204_v37 = vpop.f32.mrb[0].mxu1 }
 0x1c8   : > { %v1510_v60 = vpop.f32.mrb[1].mxu1 }
 0x1c9   : > { %v5205_v16 = vpop.f32.mrb[2].mxu1 }
 0x1ca   : > { %v1513_v3 = vpop.f32.mrb[3].mxu1 }
 0x1cf   : > { %v5208_v14 = vpop.f32.mrb[4].mxu1 }
 0x1d0   : > { %v1526_v50 = vpop.f32.mrb[5].mxu1 }
 0x1d1   : > { %v6782_v44 = vpop.f32.mrb[6].mxu1 }
 0x1d2   : > { %v6784_v10 = vpop.f32.mrb[7].mxu1 }
 0x1d7   : > { %v6786_v18 = vpop.f32.mrb[8].mxu1 }
 0x1d8   : > { %v6788_v26 = vpop.f32.mrb[9].mxu1 }
 0x1d9   : > { %v6790_v46 = vpop.f32.mrb[10].mxu1 }
 0x1da   : > { %v6792_v1 = vpop.f32.mrb[11].mxu1 }
 0x1df   : > { %v6794_v8 = vpop.f32.mrb[12].mxu1 }
 0x1e0   : > { %v6796_v22 = vpop.f32.mrb[13].mxu1 }
 0x1e1   : > { %v6798_v52 = vpop.f32.mrb[14].mxu1 }
 0x1e2   : > { %v6800_v13 = vpop.f32.mrb[15].mxu1 }
 0x1e7   : > { %v6802_v56 = vpop.f32.mrb[16].mxu1 }
 0x1e8   : > { %v6804_v23 = vpop.f32.mrb[17].mxu1 }
 0x1e9   : > { %v6806_v42 = vpop.f32.mrb[18].mxu1 }
 0x1ea   : > { %v6808_v28 = vpop.f32.mrb[19].mxu1 }
 0x1f2   : > { %v5394_v31 = vpop.f32.mrb[0].mxu0 }
 0x1f3   : > { %v5430_v57 = vadd.f32 %v5394_v31, %v5204_v37  ;;  %v3471_v61 = vpop.f32.mrb[1].mxu0 }
 0x1f4   : > { %v5431_v62 = vadd.f32 %v3471_v61, %v1510_v60  ;;  %v5395_v54 = vpop.f32.mrb[2].mxu0 }
 0x1f5   : > { %v3659_v20 = vadd.f32 %v5430_v57, %v6813_v9  ;;  %v5432_v0 = vadd.f32 %v5395_v54, %v5205_v16  ;;  %v3474_v6 = vpop.f32.mrb[3].mxu0 }
 0x1f6   : > { %v3657_v15 = vadd.f32 %v5431_v62, %v6813_v9  ;;  %v5433_v59 = vadd.f32 %v3474_v6, %v1513_v3 }
 0x1f7   : > { %v3695_v39 = vmax.f32 %v3659_v20, 0.0  ;;  %v3660_v63 = vadd.f32 %v5432_v0, %v6813_v9 }
 0x1f8   : > { %v3693_v7 = vmax.f32 %v3657_v15, 0.0  ;;  %v3658_v55 = vadd.f32 %v5433_v59, %v6813_v9 }
 0x1f9   : > { %v3947_v12 = vmul.f32 %v3778_v48, %v3695_v39  ;;  %v3696_v51 = vmax.f32 %v3660_v63, 0.0 }
 0x1fa   : > { %v3945_v2 = vmul.f32 %v3768_v25, %v3693_v7  ;;  %v3694_v4 = vmax.f32 %v3658_v55, 0.0  ;;  %v5398_v17 = vpop.f32.mrb[4].mxu0  ;;  %v3803_v25 = vpop.permute.xlu1 %3802 }
 0x1fb   : > { %v4881_v5 = vpack.c.bf16 %v3947_v12, %v3947_v12  ;;  %v3948_v36 = vmul.f32 %v3783_v30, %v3696_v51  ;;  %v5434_v49 = vadd.f32 %v5398_v17, %v5208_v14  ;;  %v3487_v34 = vpop.f32.mrb[5].mxu0  ;;  %v4499_v30 = vld [vmem:[%s6375_s17 + $0x8] sm:$0xe] }
 0x1fc   : > { %v4879_v40 = vpack.c.bf16 %v3945_v2, %v3945_v2  ;;  %v3946_v47 = vmul.f32 %v3773_v38, %v3694_v4  ;;  %v5435_v19 = vadd.f32 %v3487_v34, %v1526_v50  ;;  %v5399_v58 = vpop.f32.mrb[6].mxu0  ;;  %v6837_v4 = vpop.permute.xlu0 %3807 }
 0x1fd   : > { %v4120_v11 = vshrl.u32 %v4881_v5, 16  ;;  %v4123_v45 = vshll.u32 %v4881_v5, 16  ;;  %v4882_v53 = vpack.c.bf16 %v3948_v36, %v3948_v36  ;;  %v3663_v35 = vadd.f32 %v5434_v49, %v6813_v9  ;;  %v3490_v27 = vpop.f32.mrb[7].mxu0 }
 0x1fe   : > { %v4101_v29 = vshrl.u32 %v4879_v40, 16  ;;  %v4104_v41 = vshll.u32 %v4879_v40, 16  ;;  %v4880_v21 = vpack.c.bf16 %v3946_v47, %v3946_v47  ;;  %v3661_v37 = vadd.f32 %v5435_v19, %v6813_v9 }
 0x1ff   : > { %v4122_v60 = vrot.slane %v4120_v11, 6  ;;  %v4125_v16 = vrot.slane %v4123_v45, 7  ;;  %v4130_v3 = vshrl.u32 %v4882_v53, 16  ;;  %v4133_v14 = vshll.u32 %v4882_v53, 16 }
 0x200   : > { %v4103_v50 = vrot.slane %v4101_v29, 6  ;;  %v4106_v48 = vrot.slane %v4104_v41, 7  ;;  %v4110_v38 = vshrl.u32 %v4880_v21, 16  ;;  %v4113_v31 = vshll.u32 %v4880_v21, 16 }
 0x201   : > { %v4126_v57 = vor.u32 %v4125_v16, %v4122_v60  ;;  %v4132_v62 = vrot.slane %v4130_v3, 6  ;;  %v4135_v54 = vrot.slane %v4133_v14, 7  ;;  %v3699_v20 = vmax.f32 %v3663_v35, 0.0 }
 0x202   : > { %v4107_v6 = vor.u32 %v4106_v48, %v4103_v50  ;;  %v4112_v15 = vrot.slane %v4110_v38, 6  ;;  %v4115_v59 = vrot.slane %v4113_v31, 7  ;;  %v3697_v39 = vmax.f32 %v3661_v37, 0.0  ;;  %v5402_v63 = vpop.f32.mrb[8].mxu0 }
 0x203   : > { %v4128_v7 = vrot.slane %v4126_v57, 4  ;;  %v4136_v55 = vor.u32 %v4135_v54, %v4132_v62  ;;  %v3951_v12 = vmul.f32 %v3798_v32, %v3699_v20  ;;  %v5436_v51 = vadd.f32 %v5399_v58, %v6782_v44  ;;  %v3503_v2 = vpop.f32.mrb[9].mxu0  ;;  %v6845_v58 = vpop.permute.xlu1 %3812 }
 0x204   : > { %v4108_v17 = vrot.slane %v4107_v6, 4  ;;  %v4500_v5 = vsel %vm6825_vm1, %v4107_v6, %v4499_v30  ;;  %v4116_v36 = vor.u32 %v4115_v59, %v4112_v15  ;;  %v3949_v49 = vmul.f32 %v3788_v43, %v3697_v39  ;;  %v5403_v34 = vpop.f32.mrb[10].mxu0 }
 0x205   : > { %4501 = vst [vmem:[%s6375_s17 + $0x8] sm:$0xe] %v4500_v5  ;;  %v4137_v40 = vsel %vm6832_vm2, %v4128_v7, %v4136_v55  ;;  %v4138_v47 = vrot.slane %v4136_v55, 4  ;;  %v4885_v19 = vpack.c.bf16 %v3951_v12, %v3951_v12  ;;  %v3664_v11 = vadd.f32 %v5436_v51, %v6813_v9  ;;  %v3506_v44 = vpop.f32.mrb[11].mxu0 }
 0x206   : > { %4504 = vst.msk [vmem:[%s6375_s17 + $0x14] sm:$0xf] %vm3981_vm7, %v4137_v40  ;;  %v4117_v45 = vsel %vm6832_vm2, %v4108_v17, %v4116_v36  ;;  %v4118_v53 = vrot.slane %v4116_v36, 4  ;;  %v4883_v43 = vpack.c.bf16 %v3949_v49, %v3949_v49  ;;  %v5437_v35 = vadd.f32 %v3490_v27, %v6784_v10  ;;  %v3818_v27 = vpop.permute.xlu0 %3817 }
 0x207   : > { %4502 = vst.msk [vmem:[%s6375_s17 + $0xc] sm:$0xf] %vm3981_vm7, %v4117_v45  ;;  %v4160_v32 = vshrl.u32 %v4885_v19, 16  ;;  %v4163_v29 = vshll.u32 %v4885_v19, 16  ;;  %v3700_v41 = vmax.f32 %v3664_v11, 0.0  ;;  %v5438_v21 = vadd.f32 %v5402_v63, %v6786_v18  ;;  %v3823_v59 = vpop.permute.xlu1 %3822 }
 0x208   : > { %v4127_v37 = vsel %vm6832_vm2, %v4118_v53, %v4126_v57  ;;  %v4140_v60 = vshrl.u32 %v4883_v43, 16  ;;  %v4143_v16 = vshll.u32 %v4883_v43, 16  ;;  %v3662_v3 = vadd.f32 %v5437_v35, %v6813_v9 }
 0x209   : > { %4503 = vst.msk [vmem:[%s6375_s17 + $0x10] sm:$0xf] %vm3981_vm7, %v4127_v37  ;;  %v4162_v14 = vrot.slane %v4160_v32, 6  ;;  %v4165_v50 = vrot.slane %v4163_v29, 7  ;;  %v3952_v48 = vmul.f32 %v3803_v25, %v3700_v41  ;;  %v3667_v10 = vadd.f32 %v5438_v21, %v6813_v9 }
 0x20a   : > { %v4142_v38 = vrot.slane %v4140_v60, 6  ;;  %v4145_v31 = vrot.slane %v4143_v16, 7  ;;  %v3698_v30 = vmax.f32 %v3662_v3, 0.0  ;;  %v5439_v18 = vadd.f32 %v3503_v2, %v6788_v26  ;;  %v5406_v62 = vpop.f32.mrb[12].mxu0  ;;  %v6884_v45 = vpop.permute.xlu0 %3827 }
 0x20b   : > { %v6862_v54 = vor.u32 %v4165_v50, %v4162_v14  ;;  %v4886_v57 = vpack.c.bf16 %v3952_v48, %v3952_v48  ;;  %v3703_v20 = vmax.f32 %v3667_v10, 0.0  ;;  %v5440_v6 = vadd.f32 %v5403_v34, %v6790_v46  ;;  %v3519_v15 = vpop.f32.mrb[13].mxu0  ;;  %v6890_v60 = vpop.permute.xlu1 %3832 }
 0x20c   : > { %v4146_v39 = vor.u32 %v4145_v31, %v4142_v38  ;;  %v3950_v25 = vmul.f32 %v6819_v33, %v3698_v30  ;;  %v3665_v63 = vadd.f32 %v5439_v18, %v6813_v9  ;;  %v5441_v7 = vadd.f32 %v3506_v44, %v6792_v1  ;;  %v6868_v55 = vpop.f32.mrb[14].mxu0 }
 0x20d   : > { %v4168_v26 = vrot.slane %v6862_v54, 4  ;;  %v4170_v12 = vshrl.u32 %v4886_v57, 16  ;;  %v4173_v51 = vshll.u32 %v4886_v57, 16  ;;  %v3955_v2 = vmul.f32 %v3818_v27, %v3703_v20  ;;  %v6871_v17 = vpop.f32.mrb[15].mxu0 }
 0x20e   : > { %v4147_v5 = vsel %vm6832_vm2, %v4138_v47, %v4146_v39  ;;  %v4148_v36 = vrot.slane %v4146_v39, 4  ;;  %v4884_v33 = vpack.c.bf16 %v3950_v25, %v3950_v25  ;;  %v3701_v49 = vmax.f32 %v3665_v63, 0.0 }
 0x20f   : > { %v6873_v46 = vpop.f32.mrb[20].mxu1  ;;  %4505 = vst.msk [vmem:[%s6375_s17 + $0x18] sm:$0xf] %vm3981_vm7, %v4147_v5  ;;  %v4172_v1 = vrot.slane %v4170_v12, 6  ;;  %v4175_v40 = vrot.slane %v4173_v51, 7  ;;  %v4889_v19 = vpack.c.bf16 %v3955_v2, %v3955_v2  ;;  %v3668_v11 = vadd.f32 %v5440_v6, %v6813_v9  ;;  %v3838_v51 = vpop.permute.xlu0 %3837 }
 0x210   : > { %v6877_v34 = vpop.f32.mrb[21].mxu1  ;;  %v4150_v53 = vshrl.u32 %v4884_v33, 16  ;;  %v4153_v43 = vshll.u32 %v4884_v33, 16  ;;  %v3953_v47 = vmul.f32 %v6837_v4, %v3701_v49  ;;  %v3666_v35 = vadd.f32 %v5441_v7, %v6813_v9 }
 0x211   : > { %v6882_v44 = vpop.f32.mrb[22].mxu1  ;;  %v4176_v29 = vor.u32 %v4175_v40, %v4172_v1  ;;  %v4200_v41 = vshrl.u32 %v4889_v19, 16  ;;  %v4203_v21 = vshll.u32 %v4889_v19, 16  ;;  %v3704_v37 = vmax.f32 %v3668_v11, 0.0  ;;  %v6917_v1 = vpop.permute.xlu1 %3942 }
 0x212   : > { %v6888_v32 = vpop.f32.mrb[23].mxu1  ;;  %v4152_v16 = vrot.slane %v4150_v53, 6  ;;  %v4155_v3 = vrot.slane %v4153_v43, 7  ;;  %v4887_v14 = vpack.c.bf16 %v3953_v47, %v3953_v47  ;;  %v3702_v50 = vmax.f32 %v3666_v35, 0.0  ;;  %v5410_v48 = vpop.f32.mrb[16].mxu0 }
 0x213   : > { %v4177_v10 = vsel %vm6832_vm2, %v4168_v26, %v4176_v29  ;;  %v4178_v4 = vrot.slane %v4176_v29, 4  ;;  %v4202_v27 = vrot.slane %v4200_v41, 6  ;;  %v4205_v38 = vrot.slane %v4203_v21, 7  ;;  %v3535_v31 = vpop.f32.mrb[17].mxu0 }
 0x214   : > { %4508 = vst.msk [vmem:[%s6375_s17 + $0x24] sm:$0xf] %vm3981_vm7, %v4177_v10  ;;  %v4156_v30 = vor.u32 %v4155_v3, %v4152_v16  ;;  %v4180_v18 = vshrl.u32 %v4887_v14, 16  ;;  %v4183_v57 = vshll.u32 %v4887_v14, 16  ;;  %v3956_v20 = vmul.f32 %v3823_v59, %v3704_v37  ;;  %v6896_v6 = vpop.f32.mrb[18].mxu0  ;;  %v3843_v10 = vpop.permute.xlu0 %3842 }
 0x215   : > { %v6898_v39 = vor.u32 %v4205_v38, %v4202_v27  ;;  %v3954_v25 = vmul.f32 %v6845_v58, %v3702_v50  ;;  %v5442_v63 = vadd.f32 %v5406_v62, %v6794_v8  ;;  %v5443_v7 = vadd.f32 %v3519_v15, %v6796_v22  ;;  %v6903_v26 = vpop.f32.mrb[19].mxu0 }
 0x216   : > { %v4157_v2 = vsel %vm6832_vm2, %v4148_v36, %v4156_v30  ;;  %v4158_v5 = vrot.slane %v4156_v30, 4  ;;  %v4182_v59 = vrot.slane %v4180_v18, 6  ;;  %v4185_v33 = vrot.slane %v4183_v57, 7 }
 0x217   : > { %v6905_v12 = vpop.f32.mrb[24].mxu1  ;;  %4506 = vst.msk [vmem:[%s6375_s17 + $0x1c] sm:$0xf] %vm3981_vm7, %v4157_v2  ;;  %v4208_v8 = vrot.slane %v6898_v39, 4  ;;  %v4890_v58 = vpack.c.bf16 %v3956_v20, %v3956_v20  ;;  %v4888_v22 = vpack.c.bf16 %v3954_v25, %v3954_v25  ;;  %v3671_v62 = vadd.f32 %v5442_v63, %v6813_v9 }
 0x218   : > { %v6909_v49 = vpop.f32.mrb[25].mxu1  ;;  %v4167_v36 = vsel %vm6832_vm2, %v4158_v5, %v6862_v54  ;;  %v4186_v40 = vor.u32 %v4185_v33, %v4182_v59  ;;  %v3669_v19 = vadd.f32 %v5443_v7, %v6813_v9  ;;  %v5444_v11 = vadd.f32 %v6868_v55, %v6798_v52 }
 0x219   : > { %v6915_v15 = vpop.f32.mrb[26].mxu1  ;;  %4507 = vst.msk [vmem:[%s6375_s17 + $0x20] sm:$0xf] %vm3981_vm7, %v4167_v36  ;;  %v4210_v43 = vshrl.u32 %v4890_v58, 16  ;;  %v4213_v47 = vshll.u32 %v4890_v58, 16  ;;  %v4190_v35 = vshrl.u32 %v4888_v22, 16  ;;  %v5446_v25 = vadd.f32 %v5410_v48, %v6802_v56 }
 0x21a   : > { %v6925_v53 = vpop.f32.mrb[27].mxu1  ;;  %v4193_v29 = vshll.u32 %v4888_v22, 16  ;;  %v4187_v41 = vsel %vm6832_vm2, %v4178_v4, %v4186_v40  ;;  %v4188_v21 = vrot.slane %v4186_v40, 4  ;;  %v3707_v37 = vmax.f32 %v3671_v62, 0.0  ;;  %v6931_v16 = vpop.f32.mrb[20].mxu0 }
 0x21b   : > { %v3705_v54 = vmax.f32 %v3669_v19, 0.0  ;;  %4509 = vst.msk [vmem:[%s6375_s17 + $0x28] sm:$0xf] %vm3981_vm7, %v4187_v41  ;;  %v4212_v3 = vrot.slane %v4210_v43, 6  ;;  %v4215_v52 = vrot.slane %v4213_v47, 7  ;;  %v4192_v55 = vrot.slane %v4190_v35, 6 }
 0x21c   : > { %v4195_v14 = vrot.slane %v4193_v29, 7  ;;  %v6935_v50 = vpop.f32.mrb[21].mxu0  ;;  %v3959_v27 = vmul.f32 %v3838_v51, %v3707_v37  ;;  %v3672_v30 = vadd.f32 %v5444_v11, %v6813_v9  ;;  %v5445_v4 = vadd.f32 %v6871_v17, %v6800_v13  ;;  %v3853_v37 = vpop.permute.xlu0 %3852 }
 0x21d   : > { %v3957_v38 = vmul.f32 %v6884_v45, %v3705_v54  ;;  %v6941_v18 = vpop.f32.mrb[22].mxu0  ;;  %v4216_v57 = vor.u32 %v4215_v52, %v4212_v3  ;;  %v5447_v63 = vadd.f32 %v3535_v31, %v6804_v23  ;;  %v3848_v45 = vpop.permute.xlu1 %3847  ;;  %v3675_v43 = vadd.f32 %v5446_v25, %v6813_v9 }
 0x21e   : > { %v4196_v20 = vor.u32 %v4195_v14, %v4192_v55  ;;  %v6945_v7 = vpop.f32.mrb[23].mxu0  ;;  %v4893_v2 = vpack.c.bf16 %v3959_v27, %v3959_v27  ;;  %v3708_v59 = vmax.f32 %v3672_v30, 0.0  ;;  %v3670_v13 = vadd.f32 %v5445_v4, %v6813_v9 }
 0x21f   : > { %v6947_v51 = vpop.f32.mrb[28].mxu1  ;;  %v4891_v5 = vpack.c.bf16 %v3957_v38, %v3957_v38  ;;  %v4217_v33 = vsel %vm6832_vm2, %v4208_v8, %v4216_v57  ;;  %v4218_v56 = vrot.slane %v4216_v57, 4  ;;  %v3711_v52 = vmax.f32 %v3675_v43, 0.0 }
 0x220   : > { %v6950_v17 = vpop.f32.mrb[29].mxu1  ;;  %v4197_v23 = vsel %vm6832_vm2, %v4188_v21, %v4196_v20  ;;  %v4198_v48 = vrot.slane %v4196_v20, 4  ;;  %4512 = vst.msk [vmem:[%s6375_s17 + $0x34] sm:$0xf] %vm3981_vm7, %v4217_v33  ;;  %v4240_v58 = vshrl.u32 %v4893_v2, 16  ;;  %v4243_v22 = vshll.u32 %v4893_v2, 16 }
 0x221   : > { %v6956_v31 = vpop.f32.mrb[30].mxu1  ;;  %4510 = vst.msk [vmem:[%s6375_s17 + $0x2c] sm:$0xf] %vm3981_vm7, %v4197_v23  ;;  %v4220_v62 = vshrl.u32 %v4891_v5, 16  ;;  %v4223_v36 = vshll.u32 %v4891_v5, 16  ;;  %v3960_v19 = vmul.f32 %v3843_v10, %v3708_v59  ;;  %v3706_v11 = vmax.f32 %v3670_v13, 0.0  ;;  %v3858_v14 = vpop.permute.xlu1 %3857 }
 0x222   : > { %v6962_v40 = vpop.f32.mrb[31].mxu1  ;;  %v4207_v8 = vsel %vm6832_vm2, %v4198_v48, %v6898_v39  ;;  %v4242_v47 = vrot.slane %v4240_v58, 6  ;;  %v4245_v35 = vrot.slane %v4243_v22, 7  ;;  %v6970_v21 = vpop.f32.mrb[24].mxu0  ;;  %v3673_v55 = vadd.f32 %v5447_v63, %v6813_v9 }
 0x223   : > { %4511 = vst.msk [vmem:[%s6375_s17 + $0x30] sm:$0xf] %vm3981_vm7, %v4207_v8  ;;  %v4222_v29 = vrot.slane %v4220_v62, 6  ;;  %v4225_v41 = vrot.slane %v4223_v36, 7  ;;  %v4894_v54 = vpack.c.bf16 %v3960_v19, %v3960_v19  ;;  %v3958_v3 = vmul.f32 %v6890_v60, %v3706_v11  ;;  %v6974_v39 = vpop.f32.mrb[25].mxu0 }
 0x224   : > { %v4246_v10 = vor.u32 %v4245_v35, %v4242_v47  ;;  %v5448_v38 = vadd.f32 %v6896_v6, %v6806_v42  ;;  %v5449_v30 = vadd.f32 %v6903_v26, %v6808_v28  ;;  %v6980_v4 = vpop.f32.mrb[26].mxu0  ;;  %v3963_v25 = vmul.f32 %v3858_v14, %v3711_v52 }
 0x225   : > { %v4226_v27 = vor.u32 %v4225_v41, %v4222_v29  ;;  %v4250_v57 = vshrl.u32 %v4894_v54, 16  ;;  %v4253_v20 = vshll.u32 %v4894_v54, 16  ;;  %v4892_v60 = vpack.c.bf16 %v3958_v3, %v3958_v3  ;;  %v6982_v2 = vpop.f32.mrb[27].mxu0  ;;  %v7000_v35 = vpop.permute.xlu1 %3867 }
 0x226   : > { %v4248_v5 = vrot.slane %v4246_v10, 4  ;;  %v3709_v33 = vmax.f32 %v3673_v55, 0.0  ;;  %v4897_v58 = vpack.c.bf16 %v3963_v25, %v3963_v25  ;;  %v3676_v62 = vadd.f32 %v5448_v38, %v6813_v9 }
 0x227   : > { %v6984_v63 = vpop.f32.mrb[32].mxu1  ;;  %v4227_v59 = vsel %vm6832_vm2, %v4218_v56, %v4226_v27  ;;  %v4228_v13 = vrot.slane %v4226_v27, 4  ;;  %v4252_v28 = vrot.slane %v4250_v57, 6  ;;  %v4255_v6 = vrot.slane %v4253_v20, 7  ;;  %v3863_v56 = vpop.permute.xlu0 %3862 }
 0x228   : > { %v6988_v42 = vpop.f32.mrb[33].mxu1  ;;  %4513 = vst.msk [vmem:[%s6375_s17 + $0x38] sm:$0xf] %vm3981_vm7, %v4227_v59  ;;  %v4230_v26 = vshrl.u32 %v4892_v60, 16  ;;  %v4233_v23 = vshll.u32 %v4892_v60, 16  ;;  %v3961_v22 = vmul.f32 %v3848_v45, %v3709_v33  ;;  %v3674_v36 = vadd.f32 %v5449_v30, %v6813_v9 }
 0x229   : > { %v6992_v48 = vpop.f32.mrb[34].mxu1  ;;  %v4256_v19 = vor.u32 %v4255_v6, %v4252_v28  ;;  %v5450_v47 = vadd.f32 %v6931_v16, %v6873_v46  ;;  %v4280_v29 = vshrl.u32 %v4897_v58, 16  ;;  %v4283_v41 = vshll.u32 %v4897_v58, 16 }
 0x22a   : > { %v6996_v8 = vpop.f32.mrb[35].mxu1  ;;  %v4232_v11 = vrot.slane %v4230_v26, 6  ;;  %v4235_v43 = vrot.slane %v4233_v23, 7  ;;  %v4895_v54 = vpack.c.bf16 %v3961_v22, %v3961_v22  ;;  %v3712_v45 = vmax.f32 %v3676_v62, 0.0  ;;  %v7002_v3 = vpop.f32.mrb[28].mxu0 }
 0x22b   : > { %v4257_v52 = vsel %vm6832_vm2, %v4248_v5, %v4256_v19  ;;  %v4258_v55 = vrot.slane %v4256_v19, 4  ;;  %v3710_v27 = vmax.f32 %v3674_v36, 0.0  ;;  %v7006_v38 = vpop.f32.mrb[29].mxu0  ;;  %v4282_v46 = vrot.slane %v4280_v29, 6  ;;  %v7019_v58 = vpop.permute.xlu0 %3872 }
 0x22c   : > { %v4236_v14 = vor.u32 %v4235_v43, %v4232_v11  ;;  %4516 = vst.msk [vmem:[%s6375_s17 + $0x44] sm:$0xf] %vm3981_vm7, %v4257_v52  ;;  %v4285_v16 = vrot.slane %v4283_v41, 7  ;;  %v4260_v30 = vshrl.u32 %v4895_v54, 16  ;;  %v4263_v57 = vshll.u32 %v4895_v54, 16  ;;  %v7010_v20 = vpop.f32.mrb[30].mxu0 }
 0x22d   : > { %v3964_v5 = vmul.f32 %v3863_v56, %v3712_v45  ;;  %v3962_v59 = vmul.f32 %v3853_v37, %v3710_v27  ;;  %v7014_v33 = vpop.f32.mrb[31].mxu0  ;;  %v3679_v23 = vadd.f32 %v5450_v47, %v6813_v9  ;;  %v5451_v36 = vadd.f32 %v6935_v50, %v6877_v34  ;;  %v3878_v37 = vpop.permute.xlu1 %3877 }
 0x22e   : > { %v4237_v60 = vsel %vm6832_vm2, %v4228_v13, %v4236_v14  ;;  %v4238_v25 = vrot.slane %v4236_v14, 4  ;;  %v4286_v28 = vor.u32 %v4285_v16, %v4282_v46  ;;  %v4262_v6 = vrot.slane %v4260_v30, 6 }
 0x22f   : > { %4514 = vst.msk [vmem:[%s6375_s17 + $0x3c] sm:$0xf] %vm3981_vm7, %v4237_v60  ;;  %v4265_v26 = vrot.slane %v4263_v57, 7  ;;  %v4898_v62 = vpack.c.bf16 %v3964_v5, %v3964_v5  ;;  %v4896_v13 = vpack.c.bf16 %v3962_v59, %v3962_v59  ;;  %v3715_v11 = vmax.f32 %v3679_v23, 0.0 }
 0x230   : > { %v4247_v22 = vsel %vm6832_vm2, %v4238_v25, %v4246_v10  ;;  %v4288_v56 = vrot.slane %v4286_v28, 4  ;;  %v5452_v43 = vadd.f32 %v6941_v18, %v6882_v44  ;;  %v3677_v34 = vadd.f32 %v5451_v36, %v6813_v9  ;;  %v3883_v25 = vpop.permute.xlu0 %3882 }
 0x231   : > { %4515 = vst.msk [vmem:[%s6375_s17 + $0x40] sm:$0xf] %vm3981_vm7, %v4247_v22  ;;  %v4266_v19 = vor.u32 %v4265_v26, %v4262_v6  ;;  %v4290_v47 = vshrl.u32 %v4898_v62, 16  ;;  %v4293_v29 = vshll.u32 %v4898_v62, 16  ;;  %v4270_v41 = vshrl.u32 %v4896_v13, 16  ;;  %v3888_v22 = vpop.permute.xlu1 %3887 }
 0x232   : > { %v4273_v54 = vshll.u32 %v4896_v13, 16  ;;  %v3967_v52 = vmul.f32 %v3878_v37, %v3715_v11  ;;  %v7032_v50 = vpop.f32.mrb[32].mxu0  ;;  %v3713_v30 = vmax.f32 %v3677_v34, 0.0  ;;  %v3680_v57 = vadd.f32 %v5452_v43, %v6813_v9 }
 0x233   : > { %v4267_v10 = vsel %vm6832_vm2, %v4258_v55, %v4266_v19  ;;  %v4268_v45 = vrot.slane %v4266_v19, 4  ;;  %v4292_v14 = vrot.slane %v4290_v47, 6  ;;  %v4295_v27 = vrot.slane %v4293_v29, 7  ;;  %v7036_v44 = vpop.f32.mrb[33].mxu0 }
 0x234   : > { %4517 = vst.msk [vmem:[%s6375_s17 + $0x48] sm:$0xf] %vm3981_vm7, %v4267_v10  ;;  %v4272_v46 = vrot.slane %v4270_v41, 6  ;;  %v4275_v16 = vrot.slane %v4273_v54, 7  ;;  %v4901_v18 = vpack.c.bf16 %v3967_v52, %v3967_v52  ;;  %v5453_v55 = vadd.f32 %v6945_v7, %v6888_v32  ;;  %v7041_v60 = vpop.f32.mrb[34].mxu0 }
 0x235   : > { %v4296_v5 = vor.u32 %v4295_v27, %v4292_v14  ;;  %v5454_v6 = vadd.f32 %v6970_v21, %v6905_v12  ;;  %v5455_v26 = vadd.f32 %v6974_v39, %v6909_v49  ;;  %v7047_v23 = vpop.f32.mrb[35].mxu0  ;;  %v3965_v32 = vmul.f32 %v7000_v35, %v3713_v30  ;;  %v3898_v27 = vpop.permute.xlu1 %3897 }
 0x236   : > { %v4276_v59 = vor.u32 %v4275_v16, %v4272_v46  ;;  %v4320_v62 = vshrl.u32 %v4901_v18, 16  ;;  %v4323_v13 = vshll.u32 %v4901_v18, 16  ;;  %v3716_v7 = vmax.f32 %v3680_v57, 0.0 }
 0x237   : > { %v4297_v36 = vsel %vm6832_vm2, %v4288_v56, %v4296_v5  ;;  %v4298_v37 = vrot.slane %v4296_v5, 4  ;;  %v4899_v39 = vpack.c.bf16 %v3965_v32, %v3965_v32  ;;  %v3678_v43 = vadd.f32 %v5453_v55, %v6813_v9 }
 0x238   : > { %v4277_v19 = vsel %vm6832_vm2, %v4268_v45, %v4276_v59  ;;  %v4278_v12 = vrot.slane %v4276_v59, 4  ;;  %4520 = vst.msk [vmem:[%s6375_s17 + $0x54] sm:$0xf] %vm3981_vm7, %v4297_v36  ;;  %v4322_v49 = vrot.slane %v4320_v62, 6  ;;  %v4325_v21 = vrot.slane %v4323_v13, 7  ;;  %v7067_v45 = vpop.permute.xlu0 %3892 }
 0x239   : > { %4518 = vst.msk [vmem:[%s6375_s17 + $0x4c] sm:$0xf] %vm3981_vm7, %v4277_v19  ;;  %v3968_v11 = vmul.f32 %v3883_v25, %v3716_v7  ;;  %v3683_v56 = vadd.f32 %v5454_v6, %v6813_v9  ;;  %v3681_v47 = vadd.f32 %v5455_v26, %v6813_v9  ;;  %v4300_v41 = vshrl.u32 %v4899_v39, 16 }
 0x23a   : > { %v4287_v35 = vsel %vm6832_vm2, %v4278_v12, %v4286_v28  ;;  %v7065_v29 = vor.u32 %v4325_v21, %v4322_v49  ;;  %v4303_v54 = vshll.u32 %v4899_v39, 16  ;;  %v3714_v52 = vmax.f32 %v3678_v43, 0.0 }
 0x23b   : > { %4519 = vst.msk [vmem:[%s6375_s17 + $0x50] sm:$0xf] %vm3981_vm7, %v4287_v35  ;;  %v4902_v10 = vpack.c.bf16 %v3968_v11, %v3968_v11  ;;  %v3719_v34 = vmax.f32 %v3683_v56, 0.0  ;;  %v3717_v14 = vmax.f32 %v3681_v47, 0.0  ;;  %v5456_v28 = vadd.f32 %v6980_v4, %v6915_v15 }
 0x23c   : > { %v4328_v46 = vrot.slane %v7065_v29, 4  ;;  %v4302_v16 = vrot.slane %v4300_v41, 6  ;;  %v4305_v18 = vrot.slane %v4303_v54, 7  ;;  %v3966_v55 = vmul.f32 %v7019_v58, %v3714_v52 }
 0x23d   : > { %v4330_v30 = vshrl.u32 %v4902_v10, 16  ;;  %v4333_v57 = vshll.u32 %v4902_v10, 16  ;;  %v3971_v25 = vmul.f32 %v3898_v27, %v3719_v34  ;;  %v3969_v5 = vmul.f32 %v3888_v22, %v3717_v14  ;;  %v3903_v22 = vpop.permute.xlu0 %3902 }
 0x23e   : > { %v4306_v59 = vor.u32 %v4305_v18, %v4302_v16  ;;  %v3684_v26 = vadd.f32 %v5456_v28, %v6813_v9  ;;  %v5457_v62 = vadd.f32 %v6982_v2, %v6925_v53  ;;  %v4900_v4 = vpack.c.bf16 %v3966_v55, %v3966_v55  ;;  %v3908_v53 = vpop.permute.xlu1 %3907 }
 0x23f   : > { %v4332_v6 = vrot.slane %v4330_v30, 6  ;;  %v4335_v15 = vrot.slane %v4333_v57, 7  ;;  %v4905_v13 = vpack.c.bf16 %v3971_v25, %v3971_v25  ;;  %v4903_v32 = vpack.c.bf16 %v3969_v5, %v3969_v5 }
 0x240   : > { %v4307_v7 = vsel %vm6832_vm2, %v4298_v37, %v4306_v59  ;;  %v4308_v36 = vrot.slane %v4306_v59, 4  ;;  %v3720_v19 = vmax.f32 %v3684_v26, 0.0  ;;  %v3682_v58 = vadd.f32 %v5457_v62, %v6813_v9 }
 0x241   : > { %4521 = vst.msk [vmem:[%s6375_s17 + $0x58] sm:$0xf] %vm3981_vm7, %v4307_v7  ;;  %v4336_v12 = vor.u32 %v4335_v15, %v4332_v6  ;;  %v4310_v49 = vshrl.u32 %v4900_v4, 16  ;;  %v4313_v21 = vshll.u32 %v4900_v4, 16  ;;  %v4360_v39 = vshrl.u32 %v4905_v13, 16  ;;  %v3913_v55 = vpop.permute.xlu0 %3912 }
 0x242   : > { %v4363_v2 = vshll.u32 %v4905_v13, 16  ;;  %v4340_v11 = vshrl.u32 %v4903_v32, 16  ;;  %v4343_v35 = vshll.u32 %v4903_v32, 16  ;;  %v3972_v43 = vmul.f32 %v3903_v22, %v3720_v19  ;;  %v3918_v26 = vpop.permute.xlu1 %3917 }
 0x243   : > { %v4337_v37 = vsel %vm6832_vm2, %v4328_v46, %v4336_v12  ;;  %v4338_v56 = vrot.slane %v4336_v12, 4  ;;  %v4312_v47 = vrot.slane %v4310_v49, 6  ;;  %v4315_v41 = vrot.slane %v4313_v21, 7 }
 0x244   : > { %4524 = vst.msk [vmem:[%s6375_s17 + $0x64] sm:$0xf] %vm3981_vm7, %v4337_v37  ;;  %v4362_v54 = vrot.slane %v4360_v39, 6  ;;  %v4365_v10 = vrot.slane %v4363_v2, 7  ;;  %v4342_v52 = vrot.slane %v4340_v11, 6  ;;  %v4345_v34 = vrot.slane %v4343_v35, 7 }
 0x245   : > { %v4316_v14 = vor.u32 %v4315_v41, %v4312_v47  ;;  %v4906_v28 = vpack.c.bf16 %v3972_v43, %v3972_v43  ;;  %v3718_v27 = vmax.f32 %v3682_v58, 0.0  ;;  %v5458_v16 = vadd.f32 %v7002_v3, %v6947_v51  ;;  %v3923_v21 = vpop.permute.xlu0 %3922 }
 0x246   : > { %v7087_v18 = vor.u32 %v4365_v10, %v4362_v54  ;;  %v4346_v46 = vor.u32 %v4345_v34, %v4342_v52  ;;  %v5459_v30 = vadd.f32 %v7006_v38, %v6950_v17  ;;  %v5460_v57 = vadd.f32 %v7010_v20, %v6956_v31 }
 0x247   : > { %v4317_v25 = vsel %vm6832_vm2, %v4308_v36, %v4316_v14  ;;  %v4318_v5 = vrot.slane %v4316_v14, 4  ;;  %v4370_v59 = vshrl.u32 %v4906_v28, 16  ;;  %v4373_v6 = vshll.u32 %v4906_v28, 16 }
 0x248   : > { %4522 = vst.msk [vmem:[%s6375_s17 + $0x5c] sm:$0xf] %vm3981_vm7, %v4317_v25  ;;  %v4368_v51 = vrot.slane %v7087_v18, 4  ;;  %v4347_v3 = vsel %vm6832_vm2, %v4338_v56, %v4346_v46  ;;  %v4348_v17 = vrot.slane %v4346_v46, 4  ;;  %v3970_v38 = vmul.f32 %v7067_v45, %v3718_v27 }
 0x249   : > { %v4327_v31 = vsel %vm6832_vm2, %v4318_v5, %v7065_v29  ;;  %4525 = vst.msk [vmem:[%s6375_s17 + $0x68] sm:$0xf] %vm3981_vm7, %v4347_v3  ;;  %v4372_v20 = vrot.slane %v4370_v59, 6  ;;  %v4375_v62 = vrot.slane %v4373_v6, 7  ;;  %v3687_v15 = vadd.f32 %v5458_v16, %v6813_v9 }
 0x24a   : > { %4523 = vst.msk [vmem:[%s6375_s17 + $0x60] sm:$0xf] %vm3981_vm7, %v4327_v31  ;;  %v4904_v4 = vpack.c.bf16 %v3970_v38, %v3970_v38  ;;  %v3685_v13 = vadd.f32 %v5459_v30, %v6813_v9  ;;  %v3688_v32 = vadd.f32 %v5460_v57, %v6813_v9  ;;  %v5461_v45 = vadd.f32 %v7014_v33, %v6962_v40  ;;  %v3928_v33 = vpop.permute.xlu1 %3927 }
 0x24b   : > { %v4376_v7 = vor.u32 %v4375_v62, %v4372_v20  ;;  %v3723_v36 = vmax.f32 %v3687_v15, 0.0  ;;  %v5462_v29 = vadd.f32 %v7032_v50, %v6984_v63  ;;  %v5463_v19 = vadd.f32 %v7036_v44, %v6988_v42 }
 0x24c   : > { %v4350_v58 = vshrl.u32 %v4904_v4, 16  ;;  %v4353_v22 = vshll.u32 %v4904_v4, 16  ;;  %v3721_v12 = vmax.f32 %v3685_v13, 0.0  ;;  %v3724_v49 = vmax.f32 %v3688_v32, 0.0 }
 0x24d   : > { %v4377_v39 = vsel %vm6832_vm2, %v4368_v51, %v4376_v7  ;;  %v4378_v2 = vrot.slane %v4376_v7, 4  ;;  %v3975_v11 = vmul.f32 %v3918_v26, %v3723_v36  ;;  %v3686_v40 = vadd.f32 %v5461_v45, %v6813_v9 }
 0x24e   : > { %4528 = vst.msk [vmem:[%s6375_s17 + $0x74] sm:$0xf] %vm3981_vm7, %v4377_v39  ;;  %v4352_v35 = vrot.slane %v4350_v58, 6  ;;  %v4355_v63 = vrot.slane %v4353_v22, 7  ;;  %v3973_v50 = vmul.f32 %v3908_v53, %v3721_v12  ;;  %v3976_v43 = vmul.f32 %v3923_v21, %v3724_v49  ;;  %v3938_v59 = vpop.permute.xlu1 %3937 }
 0x24f   : > { %v4909_v42 = vpack.c.bf16 %v3975_v11, %v3975_v11  ;;  %v3722_v44 = vmax.f32 %v3686_v40, 0.0  ;;  %v3691_v37 = vadd.f32 %v5462_v29, %v6813_v9  ;;  %v3689_v56 = vadd.f32 %v5463_v19, %v6813_v9 }
 0x250   : > { %v4356_v47 = vor.u32 %v4355_v63, %v4352_v35  ;;  %v4907_v41 = vpack.c.bf16 %v3973_v50, %v3973_v50  ;;  %v4910_v54 = vpack.c.bf16 %v3976_v43, %v3976_v43  ;;  %v5464_v10 = vadd.f32 %v7041_v60, %v6992_v48 }
 0x251   : > { %v4400_v52 = vshrl.u32 %v4909_v42, 16  ;;  %v4403_v34 = vshll.u32 %v4909_v42, 16  ;;  %v3974_v14 = vmul.f32 %v3913_v55, %v3722_v44  ;;  %v3727_v28 = vmax.f32 %v3691_v37, 0.0 }
 0x252   : > { %v4357_v53 = vsel %vm6832_vm2, %v4348_v17, %v4356_v47  ;;  %v4358_v27 = vrot.slane %v4356_v47, 4  ;;  %v4380_v16 = vshrl.u32 %v4907_v41, 16  ;;  %v4383_v46 = vshll.u32 %v4907_v41, 16 }
 0x253   : > { %4526 = vst.msk [vmem:[%s6375_s17 + $0x6c] sm:$0xf] %vm3981_vm7, %v4357_v53  ;;  %v4402_v30 = vrot.slane %v4400_v52, 6  ;;  %v4405_v57 = vrot.slane %v4403_v34, 7  ;;  %v4410_v25 = vshrl.u32 %v4910_v54, 16  ;;  %v4413_v5 = vshll.u32 %v4910_v54, 16 }
 0x254   : > { %v4367_v48 = vsel %vm6832_vm2, %v4358_v27, %v7087_v18  ;;  %v4382_v60 = vrot.slane %v4380_v16, 6  ;;  %v4385_v55 = vrot.slane %v4383_v46, 7  ;;  %v4908_v6 = vpack.c.bf16 %v3974_v14, %v3974_v14  ;;  %v4537_v46 = vld [vmem:[%s6375_s17 + $0x98] sm:$0x3] }
 0x255   : > { %4527 = vst.msk [vmem:[%s6375_s17 + $0x70] sm:$0xf] %vm3981_vm7, %v4367_v48  ;;  %v4406_v26 = vor.u32 %v4405_v57, %v4402_v30  ;;  %v4412_v51 = vrot.slane %v4410_v25, 6  ;;  %v4415_v3 = vrot.slane %v4413_v5, 7  ;;  %v3979_v17 = vmul.f32 %v3938_v59, %v3727_v28 }
 0x256   : > { %v4386_v38 = vor.u32 %v4385_v55, %v4382_v60  ;;  %v4390_v31 = vshrl.u32 %v4908_v6, 16  ;;  %v4393_v20 = vshll.u32 %v4908_v6, 16  ;;  %v3725_v62 = vmax.f32 %v3689_v56, 0.0 }
 0x257   : > { %v4408_v15 = vrot.slane %v4406_v26, 4  ;;  %v4416_v4 = vor.u32 %v4415_v3, %v4412_v51  ;;  %v4913_v13 = vpack.c.bf16 %v3979_v17, %v3979_v17  ;;  %v3692_v18 = vadd.f32 %v5464_v10, %v6813_v9 }
 0x258   : > { %v4387_v32 = vsel %vm6832_vm2, %v4378_v2, %v4386_v38  ;;  %v4388_v45 = vrot.slane %v4386_v38, 4  ;;  %v4392_v7 = vrot.slane %v4390_v31, 6  ;;  %v4395_v36 = vrot.slane %v4393_v20, 7 }
 0x259   : > { %4529 = vst.msk [vmem:[%s6375_s17 + $0x78] sm:$0xf] %vm3981_vm7, %v4387_v32  ;;  %v4417_v29 = vsel %vm6832_vm2, %v4408_v15, %v4416_v4  ;;  %v4440_v19 = vshrl.u32 %v4913_v13, 16  ;;  %v4443_v58 = vshll.u32 %v4913_v13, 16  ;;  %v3977_v12 = vmul.f32 %v3928_v33, %v3725_v62  ;;  %v5803_v33 = vld [vmem:[%s7187_s2] ss:$0 sm:$0xff] }
 0x25a   : > { %4532 = vst.msk [vmem:[%s6375_s17 + $0x84] sm:$0xf] %vm3981_vm7, %v4417_v29  ;;  %v4396_v22 = vor.u32 %v4395_v36, %v4392_v7  ;;  %v3728_v49 = vmax.f32 %v3692_v18, 0.0  ;;  %v5465_v9 = vadd.f32 %v7047_v23, %v6996_v8  ;;  %v4418_v54 = vrot.slane %v4416_v4, 4 }
 0x25b   : > { %v4442_v21 = vrot.slane %v4440_v19, 6  ;;  %v4445_v39 = vrot.slane %v4443_v58, 7  ;;  %v4911_v40 = vpack.c.bf16 %v3977_v12, %v3977_v12 }
 0x25c   : > { %v4397_v2 = vsel %vm6832_vm2, %v4388_v45, %v4396_v22  ;;  %v4398_v11 = vrot.slane %v4396_v22, 4  ;;  %v3980_v35 = vmul.f32 %v6917_v1, %v3728_v49  ;;  %v3690_v50 = vadd.f32 %v5803_v33, %v5465_v9  ;;  %v3933_v1 = vpop.permute.xlu0 %3932 }
 0x25d   : > { %4530 = vst.msk [vmem:[%s6375_s17 + $0x7c] sm:$0xf] %vm3981_vm7, %v4397_v2  ;;  %v4446_v63 = vor.u32 %v4445_v39, %v4442_v21  ;;  %v4420_v23 = vshrl.u32 %v4911_v40, 16  ;;  %v4423_v43 = vshll.u32 %v4911_v40, 16 }
 0x25e   : > { %v4407_v8 = vsel %vm6832_vm2, %v4398_v11, %v4406_v26  ;;  %v4914_v42 = vpack.c.bf16 %v3980_v35, %v3980_v35  ;;  %v3726_v44 = vmax.f32 %v3690_v50, 0.0 }
 0x25f   : > { %4531 = vst.msk [vmem:[%s6375_s17 + $0x80] sm:$0xf] %vm3981_vm7, %v4407_v8  ;;  %v4422_v37 = vrot.slane %v4420_v23, 6  ;;  %v4425_v56 = vrot.slane %v4423_v43, 7  ;;  %v4448_v52 = vrot.slane %v4446_v63, 4 }
 0x260   : > { %v4450_v47 = vshrl.u32 %v4914_v42, 16  ;;  %v4453_v41 = vshll.u32 %v4914_v42, 16  ;;  %v3978_v10 = vmul.f32 %v3933_v1, %v3726_v44 }
 0x261   : > { %v4426_v34 = vor.u32 %v4425_v56, %v4422_v37 }
 0x262   : > { %v4452_v14 = vrot.slane %v4450_v47, 6  ;;  %v4455_v28 = vrot.slane %v4453_v41, 7  ;;  %v4912_v53 = vpack.c.bf16 %v3978_v10, %v3978_v10 }
 0x263   : > { %v4427_v27 = vsel %vm6832_vm2, %v4418_v54, %v4426_v34  ;;  %v4428_v59 = vrot.slane %v4426_v34, 4 }
 0x264   : > { %v4456_v16 = vor.u32 %v4455_v28, %v4452_v14  ;;  %4533 = vst.msk [vmem:[%s6375_s17 + $0x88] sm:$0xf] %vm3981_vm7, %v4427_v27  ;;  %v4430_v30 = vshrl.u32 %v4912_v53, 16  ;;  %v4433_v57 = vshll.u32 %v4912_v53, 16 }
 0x266   : > { %v4457_v25 = vsel %vm6832_vm2, %v4448_v52, %v4456_v16  ;;  %v4458_v5 = vrot.slane %v4456_v16, 4  ;;  %v4432_v48 = vrot.slane %v4430_v30, 6  ;;  %v4435_v60 = vrot.slane %v4433_v57, 7 }
 0x267   : > { %4536 = vst.msk [vmem:[%s6375_s17 + $0x94] sm:$0xf] %vm3981_vm7, %v4457_v25 }
 0x268   : > { %v4538_v55 = vsel %vm6774_vm13, %v4458_v5, %v4537_v46  ;;  %v4436_v6 = vor.u32 %v4435_v60, %v4432_v48 }
 0x269   : > { %4539 = vst [vmem:[%s6375_s17 + $0x98] sm:$0x3] %v4538_v55 }
 0x26a   : > { %v4437_v26 = vsel %vm6832_vm2, %v4428_v59, %v4436_v6  ;;  %v4438_v51 = vrot.slane %v4436_v6, 4 }
 0x26b   : > { %4534 = vst.msk [vmem:[%s6375_s17 + $0x8c] sm:$0xf] %vm3981_vm7, %v4437_v26 }
 0x26c   : > { %v4447_v3 = vsel %vm6832_vm2, %v4438_v51, %v4446_v63 }
 0x26d   : > { %4535 = vst.msk [vmem:[%s6375_s17 + $0x90] sm:$0xf] %vm3981_vm7, %v4447_v3 }
 0x270   : > { %v4540_v17 = vld [vmem:[%s6375_s17 + $0x98] sm:$0xe] }
 0x271   : > { %v4541_v38 = vsel %vm6825_vm1, 0, %v4540_v17 }
 0x272   : > { %4542 = vst [vmem:[%s6375_s17 + $0x98] sm:$0xe] %v4541_v38 }
 0x273 PF: > { %s14_s15 = sadd.s32 1, %s5810_s15  }
 0x274   : > { %p11_p4 = scmp.ge.s32.totalorder %s14_s15, 4  }
 0x276   :  { %13 = sbr.rel (!%p11_p4) target bundleno = 1 (0x1), region = 74 }

</bundles_post_ra>
